<compile_context>
chip_gen: v7x
topology: tpu7x:2x2x1
jax: 0.10.0
libtpu: 0.0.40
codegen_flags: <defaults>
</compile_context>

<pallas_src>
import functools

import jax
import jax.numpy as jnp
from jax.experimental import pallas as pl
from jax.experimental.pallas import tpu as pltpu


# ------------------------------------------------------------------
# Fused bidirectional-LSTM + Linear kernel
# ------------------------------------------------------------------
def _bilstm_kernel(x_ref, w_in_ref, b_in_ref, w_hh_f_ref, w_hh_b_ref,
                   w_emb_ref, b_emb_ref, o_ref, gx_scr, rec_scr, *, T, B, H):
    """x_ref: (T*B, n_in). Gate column order per direction: [i | f | o | g]."""
    H2, H3, H4 = 2 * H, 3 * H, 4 * H

    # ---- 1) input projection for all timesteps & both directions: one big GEMM
    #         (hoisted off the serial path, bias fused).
    gx_scr[...] = (
        jnp.dot(x_ref[...], w_in_ref[...], preferred_element_type=jnp.float32)
        + b_in_ref[...]
    )

    # ---- 2) both recurrences as two independent dependency chains.
    def cell(gates, c):
        # one sigmoid over (B, 3H) + one tanh over (B, H)  [gate order i,f,o | g]
        sg = jax.nn.sigmoid(gates[:, :H3])
        g = jnp.tanh(gates[:, H3:])
        c_new = sg[:, H:H2] * c + sg[:, :H] * g
        h_new = sg[:, H2:H3] * jnp.tanh(c_new)
        return h_new, c_new

    def step(s, carry):
        h_f, c_f, h_b, c_b = carry
        row_f = s * B
        row_b = (T - 1 - s) * B            # backward direction walks time in reverse
        if not isinstance(s, int):         # dynamic index (fori_loop): alignment hint
            row_f = pl.multiple_of(row_f, B)
            row_b = pl.multiple_of(row_b, B)

        # two small, independent recurrent matmuls (fwd / bwd)
        g_f = (jnp.dot(h_f, w_hh_f_ref[...], preferred_element_type=jnp.float32)
               + gx_scr[pl.ds(row_f, B), pl.ds(0, H4)])
        g_b = (jnp.dot(h_b, w_hh_b_ref[...], preferred_element_type=jnp.float32)
               + gx_scr[pl.ds(row_b, B), pl.ds(H4, H4)])

        h_f, c_f = cell(g_f, c_f)
        h_b, c_b = cell(g_b, c_b)

        # fwd hidden in lanes [0:H], bwd hidden in lanes [H:2H] of one scratch
        rec_scr[pl.ds(row_f, B), pl.ds(0, H)] = h_f
        rec_scr[pl.ds(row_b, B), pl.ds(H, H)] = h_b
        return h_f, c_f, h_b, c_b

    z = jnp.zeros((B, H), jnp.float32)
    carry = (z, z, z, z)
    if T <= 16:
        # small T: full static unroll (maximum scheduler visibility)
        for s in range(T):
            carry = step(s, carry)
    else:
        # large T: bounded unroll keeps vreg pressure / code size in check
        carry = jax.lax.fori_loop(0, T, step, carry, unroll=4)

    # ---- 3) fused embedding Linear: single (N, 2H) @ (2H, n_out) GEMM + bias,
    #         single HBM writeback.
    o_ref[...] = (
        jnp.dot(rec_scr[...], w_emb_ref[...], preferred_element_type=jnp.float32)
        + b_emb_ref[...]
    )


# ------------------------------------------------------------------
# One-time weight preprocessing (hoisted out of the per-call hot path)
# ------------------------------------------------------------------
def pack_bilstm_params(params):
    """PyTorch layouts in: w_ih_*: (4H, n_in), w_hh_*: (4H, H), b_*: (4H,),
    w_emb: (n_out, 2H), b_emb: (n_out,).  PyTorch gate row order is [i,f,g,o];
    we reorder to [i,f,o,g] so the kernel does one wide sigmoid + one tanh."""
    f32 = jnp.float32
    H = params["w_hh_f"].shape[1]
    n_out = params["w_emb"].shape[0]

    def reorder(w):                        # rows/entries [i;f;g;o] -> [i;f;o;g]
        i, f, g, o = jnp.split(w, 4, axis=0)
        return jnp.concatenate([i, f, o, g], axis=0)

    w_in = jnp.concatenate([reorder(params["w_ih_f"]).T,
                            reorder(params["w_ih_b"]).T], axis=1).astype(f32)   # (n_in, 8H)
    b_in = jnp.concatenate(
        [reorder(params["b_ih_f"] + params["b_hh_f"]),
         reorder(params["b_ih_b"] + params["b_hh_b"])]).reshape(1, 8 * H).astype(f32)

    return {
        "w_in": w_in,                                         # (n_in, 8H)
        "b_in": b_in,                                         # (1, 8H)
        "w_hh_f": reorder(params["w_hh_f"]).T.astype(f32),    # (H, 4H)
        "w_hh_b": reorder(params["w_hh_b"]).T.astype(f32),    # (H, 4H)
        "w_emb": params["w_emb"].T.astype(f32),               # (2H, n_out)
        "b_emb": params["b_emb"].reshape(1, n_out).astype(f32),
    }


# ------------------------------------------------------------------
# Wrapper
# ------------------------------------------------------------------
def bidirectional_lstm(x, packed):
    """x: (T, B, n_in) time-major. Returns (T, B, n_out)."""
    T, B, n_in = x.shape
    H = packed["w_hh_f"].shape[0]
    n_out = packed["w_emb"].shape[1]
    f32 = jnp.float32

    # Pad batch to a sublane multiple so every per-timestep scratch slice is an
    # unmasked, tile-aligned access.  (Real workloads: batch >= 8 directly.)
    B_pad = max(8, ((B + 7) // 8) * 8)
    if B_pad != B:
        x = jnp.pad(x, ((0, 0), (0, B_pad - B), (0, 0)))
    N = T * B_pad

    # Explicit VMEM budget for the everything-resident design.
    # TODO(synk): once this approaches the physical limit (64 MiB on v7x),
    # tile the time axis as an 'arbitrary' grid axis (h/c carried in scratch,
    # gx computed per time-chunk) instead of raising the limit.
    scratch_bytes = N * (8 * H + 2 * H) * 4
    io_bytes = N * (n_in + n_out) * 4 * 2
    w_bytes = (n_in * 8 * H + 8 * H + 2 * H * 4 * H + 2 * H * n_out + n_out) * 4 * 2
    vmem_limit = int(min(128 * 1024 * 1024,
                         max(32 * 1024 * 1024,
                             2 * (scratch_bytes + io_bytes + w_bytes))))

    kernel = functools.partial(_bilstm_kernel, T=T, B=B_pad, H=H)

    # TODO(synk): on v7x (2 TensorCores), split the two directions across cores
    # via a size-2 'parallel' grid axis (one recurrence per core) for ~2x on the
    # latency-bound recurrence.
    out_flat = pl.pallas_call(
        kernel,
        out_shape=jax.ShapeDtypeStruct((N, n_out), f32),
        grid=(1,),
        in_specs=[
            pl.BlockSpec((N, n_in), lambda i: (0, 0)),
            pl.BlockSpec((n_in, 8 * H), lambda i: (0, 0)),
            pl.BlockSpec((1, 8 * H), lambda i: (0, 0)),
            pl.BlockSpec((H, 4 * H), lambda i: (0, 0)),
            pl.BlockSpec((H, 4 * H), lambda i: (0, 0)),
            pl.BlockSpec((2 * H, n_out), lambda i: (0, 0)),
            pl.BlockSpec((1, n_out), lambda i: (0, 0)),
        ],
        out_specs=pl.BlockSpec((N, n_out), lambda i: (0, 0)),
        scratch_shapes=[
            pltpu.VMEM((N, 8 * H), f32),   # input-projection gates, all timesteps
            pltpu.VMEM((N, 2 * H), f32),   # [fwd | bwd] hidden states, time-ordered
        ],
        compiler_params=pltpu.CompilerParams(
            dimension_semantics=("arbitrary",),
            vmem_limit_bytes=vmem_limit,
        ),
    )(x.reshape(N, n_in), packed["w_in"], packed["b_in"], packed["w_hh_f"],
      packed["w_hh_b"], packed["w_emb"], packed["b_emb"])

    out = out_flat.reshape(T, B_pad, n_out)
    return out[:, :B, :] if B_pad != B else out


# ------------------------------------------------------------------
# Pure-JAX reference (correctness check only; uses raw PyTorch-layout params)
# ------------------------------------------------------------------
def _lstm_ref_dir(x, w_ih, w_hh, b_ih, b_hh):
    H = w_hh.shape[1]
    B = x.shape[1]

    def step(carry, x_t):
        h, c = carry
        gates = x_t @ w_ih.T + h @ w_hh.T + b_ih + b_hh
        i = jax.nn.sigmoid(gates[:, :H])
        f = jax.nn.sigmoid(gates[:, H:2 * H])
        g = jnp.tanh(gates[:, 2 * H:3 * H])
        o = jax.nn.sigmoid(gates[:, 3 * H:])
        c = f * c + i * g
        h = o * jnp.tanh(c)
        return (h, c), h

    init = (jnp.zeros((B, H), jnp.float32), jnp.zeros((B, H), jnp.float32))
    _, ys = jax.lax.scan(step, init, x)
    return ys


def _ref(x, p):
    T, B, _ = x.shape
    hf = _lstm_ref_dir(x, p["w_ih_f"], p["w_hh_f"], p["b_ih_f"], p["b_hh_f"])
    hb = _lstm_ref_dir(x[::-1], p["w_ih_b"], p["w_hh_b"], p["b_ih_b"], p["b_hh_b"])[::-1]
    rec = jnp.concatenate([hf, hb], axis=-1).reshape(T * B, -1)
    out = rec @ p["w_emb"].T + p["b_emb"]
    return out.reshape(T, B, -1)


# ------------------------------------------------------------------
if __name__ == "__main__":
    T, B = 8, 2
    n_in, n_hidden, n_out = 16, 32, 16

    key = jax.random.PRNGKey(0)
    keys = jax.random.split(key, 12)
    k = 1.0 / jnp.sqrt(n_hidden)

    def u(kk, shape):
        return jax.random.uniform(kk, shape, jnp.float32, -k, k)

    params = {
        # forward direction
        "w_ih_f": u(keys[0], (4 * n_hidden, n_in)),
        "w_hh_f": u(keys[1], (4 * n_hidden, n_hidden)),
        "b_ih_f": u(keys[2], (4 * n_hidden,)),
        "b_hh_f": u(keys[3], (4 * n_hidden,)),
        # backward direction
        "w_ih_b": u(keys[4], (4 * n_hidden, n_in)),
        "w_hh_b": u(keys[5], (4 * n_hidden, n_hidden)),
        "b_ih_b": u(keys[6], (4 * n_hidden,)),
        "b_hh_b": u(keys[7], (4 * n_hidden,)),
        # embedding Linear(2H -> n_out)
        "w_emb": u(keys[8], (n_out, 2 * n_hidden)),
        "b_emb": u(keys[9], (n_out,)),
    }

    x = jax.random.normal(keys[10], (T, B, n_in), jnp.float32)

    # Pack weights ONCE (hoisted preprocessing), then run the fused kernel.
    packed = pack_bilstm_params(params)
    packed = jax.tree_util.tree_map(jax.block_until_ready, packed)

    out = jax.block_until_ready(jax.jit(bidirectional_lstm)(x, packed))
    ref = jax.block_until_ready(_ref(x, params))

    assert out.shape == (T, B, n_out), out.shape
    err = float(jnp.max(jnp.abs(out - ref)))
    assert err < 2e-3, err

    print("KERNEL_OK")
</pallas_src>

<mosaic_0001>
module attributes {stable_mosaic.version = 11 : i64} {
  func.func @_bilstm_kernel(%arg0: i32, %arg1: memref<64x16xf32, #tpu.memory_space<vmem>>, %arg2: memref<16x256xf32, #tpu.memory_space<vmem>>, %arg3: memref<1x256xf32, #tpu.memory_space<vmem>>, %arg4: memref<32x128xf32, #tpu.memory_space<vmem>>, %arg5: memref<32x128xf32, #tpu.memory_space<vmem>>, %arg6: memref<64x16xf32, #tpu.memory_space<vmem>>, %arg7: memref<1x16xf32, #tpu.memory_space<vmem>>, %arg8: memref<64x16xf32, #tpu.memory_space<vmem>>, %arg9: memref<64x256xf32, #tpu.memory_space<vmem>>, %arg10: memref<64x64xf32, #tpu.memory_space<vmem>>) attributes {dimension_semantics = [#tpu.dimension_semantics<arbitrary>], iteration_bounds = array<i64: 1>, scalar_prefetch = 0 : i64, scratch_operands = 2 : i64, tpu.core_type = #tpu.core_type<tc>, window_params = [{pipeline_mode = #tpu.pipeline_mode<synchronous>, transform_indices = @transform_0, window_bounds = array<i64: 64, 16>}, {pipeline_mode = #tpu.pipeline_mode<synchronous>, transform_indices = @transform_1, window_bounds = array<i64: 16, 256>}, {pipeline_mode = #tpu.pipeline_mode<synchronous>, transform_indices = @transform_2, window_bounds = array<i64: 1, 256>}, {pipeline_mode = #tpu.pipeline_mode<synchronous>, transform_indices = @transform_3, window_bounds = array<i64: 32, 128>}, {pipeline_mode = #tpu.pipeline_mode<synchronous>, transform_indices = @transform_4, window_bounds = array<i64: 32, 128>}, {pipeline_mode = #tpu.pipeline_mode<synchronous>, transform_indices = @transform_5, window_bounds = array<i64: 64, 16>}, {pipeline_mode = #tpu.pipeline_mode<synchronous>, transform_indices = @transform_6, window_bounds = array<i64: 1, 16>}, {pipeline_mode = #tpu.pipeline_mode<synchronous>, transform_indices = @transform_7, window_bounds = array<i64: 64, 16>}]} {
    %c0 = arith.constant 0 : index
    %c0_0 = arith.constant 0 : index
    %0 = vector.load %arg1[%c0, %c0_0] : memref<64x16xf32, #tpu.memory_space<vmem>>, vector<64x16xf32>
    %c0_1 = arith.constant 0 : index
    %c0_2 = arith.constant 0 : index
    %1 = vector.load %arg2[%c0_1, %c0_2] : memref<16x256xf32, #tpu.memory_space<vmem>>, vector<16x256xf32>
    %cst = arith.constant dense<0.000000e+00> : vector<64x256xf32>
    %2 = tpu.matmul %0, %1, %cst {dimension_numbers = #tpu.dot_dimension_numbers<[1], [0], [0], [1], [0, 0, 1, 1], [], []>} : vector<64x16xf32>, vector<16x256xf32>, vector<64x256xf32> -> vector<64x256xf32>
    %c0_3 = arith.constant 0 : index
    %c0_4 = arith.constant 0 : index
    %3 = vector.load %arg3[%c0_3, %c0_4] : memref<1x256xf32, #tpu.memory_space<vmem>>, vector<1x256xf32>
    %4 = vector.broadcast %3 : vector<1x256xf32> to vector<64x256xf32>
    %5 = arith.addf %2, %4 : vector<64x256xf32>
    %c0_5 = arith.constant 0 : index
    %c0_6 = arith.constant 0 : index
    %6 = vector.load %arg9[%c0_5, %c0_6] : memref<64x256xf32, #tpu.memory_space<vmem>>, vector<64x256xf32>
    tpu.vector_store %arg9[%c0_5, %c0_6], %5 {strides = array<i32>} : memref<64x256xf32, #tpu.memory_space<vmem>>, vector<64x256xf32>,
    %cst_7 = arith.constant 0.000000e+00 : f32
    %7 = vector.broadcast %cst_7 : f32 to vector<8x32xf32>
    %c0_8 = arith.constant 0 : index
    %c0_9 = arith.constant 0 : index
    %8 = vector.load %arg4[%c0_8, %c0_9] : memref<32x128xf32, #tpu.memory_space<vmem>>, vector<32x128xf32>
    %cst_10 = arith.constant dense<0.000000e+00> : vector<8x128xf32>
    %9 = tpu.matmul %7, %8, %cst_10 {dimension_numbers = #tpu.dot_dimension_numbers<[1], [0], [0], [1], [0, 0, 1, 1], [], []>} : vector<8x32xf32>, vector<32x128xf32>, vector<8x128xf32> -> vector<8x128xf32>
    %c0_11 = arith.constant 0 : index
    %c0_12 = arith.constant 0 : index
    %10 = vector.load %arg9[%c0_11, %c0_12] : memref<64x256xf32, #tpu.memory_space<vmem>>, vector<8x128xf32>
    %11 = arith.addf %9, %10 : vector<8x128xf32>
    %c0_13 = arith.constant 0 : index
    %c0_14 = arith.constant 0 : index
    %12 = vector.load %arg5[%c0_13, %c0_14] : memref<32x128xf32, #tpu.memory_space<vmem>>, vector<32x128xf32>
    %cst_15 = arith.constant dense<0.000000e+00> : vector<8x128xf32>
    %13 = tpu.matmul %7, %12, %cst_15 {dimension_numbers = #tpu.dot_dimension_numbers<[1], [0], [0], [1], [0, 0, 1, 1], [], []>} : vector<8x32xf32>, vector<32x128xf32>, vector<8x128xf32> -> vector<8x128xf32>
    %c56 = arith.constant 56 : index
    %c128 = arith.constant 128 : index
    %14 = vector.load %arg9[%c56, %c128] : memref<64x256xf32, #tpu.memory_space<vmem>>, vector<8x128xf32>
    %15 = arith.addf %13, %14 : vector<8x128xf32>
    %16 = vector.extract_strided_slice %11 {offsets = [0, 0], sizes = [8, 96], strides = [1, 1]} : vector<8x128xf32> to vector<8x96xf32>
    %17 = arith.negf %16 : vector<8x96xf32>
    %18 = math.exp %17 : vector<8x96xf32>
    %cst_16 = arith.constant 1.000000e+00 : f32
    %19 = vector.broadcast %cst_16 : f32 to vector<8x96xf32>
    %20 = arith.addf %19, %18 : vector<8x96xf32>
    %21 = arith.divf %19, %20 : vector<8x96xf32>
    %22 = vector.extract_strided_slice %11 {offsets = [0, 96], sizes = [8, 32], strides = [1, 1]} : vector<8x128xf32> to vector<8x32xf32>
    %23 = math.tanh %22 : vector<8x32xf32>
    %24 = vector.extract_strided_slice %21 {offsets = [0, 32], sizes = [8, 32], strides = [1, 1]} : vector<8x96xf32> to vector<8x32xf32>
    %25 = arith.mulf %24, %7 : vector<8x32xf32>
    %26 = vector.extract_strided_slice %21 {offsets = [0, 0], sizes = [8, 32], strides = [1, 1]} : vector<8x96xf32> to vector<8x32xf32>
    %27 = arith.mulf %26, %23 : vector<8x32xf32>
    %28 = arith.addf %25, %27 : vector<8x32xf32>
    %29 = vector.extract_strided_slice %21 {offsets = [0, 64], sizes = [8, 32], strides = [1, 1]} : vector<8x96xf32> to vector<8x32xf32>
    %30 = math.tanh %28 : vector<8x32xf32>
    %31 = arith.mulf %29, %30 : vector<8x32xf32>
    %32 = vector.extract_strided_slice %15 {offsets = [0, 0], sizes = [8, 96], strides = [1, 1]} : vector<8x128xf32> to vector<8x96xf32>
    %33 = arith.negf %32 : vector<8x96xf32>
    %34 = math.exp %33 : vector<8x96xf32>
    %cst_17 = arith.constant 1.000000e+00 : f32
    %35 = vector.broadcast %cst_17 : f32 to vector<8x96xf32>
    %36 = arith.addf %35, %34 : vector<8x96xf32>
    %37 = arith.divf %35, %36 : vector<8x96xf32>
    %38 = vector.extract_strided_slice %15 {offsets = [0, 96], sizes = [8, 32], strides = [1, 1]} : vector<8x128xf32> to vector<8x32xf32>
    %39 = math.tanh %38 : vector<8x32xf32>
    %40 = vector.extract_strided_slice %37 {offsets = [0, 32], sizes = [8, 32], strides = [1, 1]} : vector<8x96xf32> to vector<8x32xf32>
    %41 = arith.mulf %40, %7 : vector<8x32xf32>
    %42 = vector.extract_strided_slice %37 {offsets = [0, 0], sizes = [8, 32], strides = [1, 1]} : vector<8x96xf32> to vector<8x32xf32>
    %43 = arith.mulf %42, %39 : vector<8x32xf32>
    %44 = arith.addf %41, %43 : vector<8x32xf32>
    %45 = vector.extract_strided_slice %37 {offsets = [0, 64], sizes = [8, 32], strides = [1, 1]} : vector<8x96xf32> to vector<8x32xf32>
    %46 = math.tanh %44 : vector<8x32xf32>
    %47 = arith.mulf %45, %46 : vector<8x32xf32>
    %c0_18 = arith.constant 0 : index
    %c0_19 = arith.constant 0 : index
    %48 = vector.load %arg10[%c0_18, %c0_19] : memref<64x64xf32, #tpu.memory_space<vmem>>, vector<8x32xf32>
    tpu.vector_store %arg10[%c0_18, %c0_19], %31 {strides = array<i32>} : memref<64x64xf32, #tpu.memory_space<vmem>>, vector<8x32xf32>,
    %c56_20 = arith.constant 56 : index
    %c32 = arith.constant 32 : index
    %49 = vector.load %arg10[%c56_20, %c32] : memref<64x64xf32, #tpu.memory_space<vmem>>, vector<8x32xf32>
    tpu.vector_store %arg10[%c56_20, %c32], %47 {strides = array<i32>} : memref<64x64xf32, #tpu.memory_space<vmem>>, vector<8x32xf32>,
    %c0_21 = arith.constant 0 : index
    %c0_22 = arith.constant 0 : index
    %50 = vector.load %arg4[%c0_21, %c0_22] : memref<32x128xf32, #tpu.memory_space<vmem>>, vector<32x128xf32>
    %cst_23 = arith.constant dense<0.000000e+00> : vector<8x128xf32>
    %51 = tpu.matmul %31, %50, %cst_23 {dimension_numbers = #tpu.dot_dimension_numbers<[1], [0], [0], [1], [0, 0, 1, 1], [], []>} : vector<8x32xf32>, vector<32x128xf32>, vector<8x128xf32> -> vector<8x128xf32>
    %c8 = arith.constant 8 : index
    %c0_24 = arith.constant 0 : index
    %52 = vector.load %arg9[%c8, %c0_24] : memref<64x256xf32, #tpu.memory_space<vmem>>, vector<8x128xf32>
    %53 = arith.addf %51, %52 : vector<8x128xf32>
    %c0_25 = arith.constant 0 : index
    %c0_26 = arith.constant 0 : index
    %54 = vector.load %arg5[%c0_25, %c0_26] : memref<32x128xf32, #tpu.memory_space<vmem>>, vector<32x128xf32>
    %cst_27 = arith.constant dense<0.000000e+00> : vector<8x128xf32>
    %55 = tpu.matmul %47, %54, %cst_27 {dimension_numbers = #tpu.dot_dimension_numbers<[1], [0], [0], [1], [0, 0, 1, 1], [], []>} : vector<8x32xf32>, vector<32x128xf32>, vector<8x128xf32> -> vector<8x128xf32>
    %c48 = arith.constant 48 : index
    %c128_28 = arith.constant 128 : index
    %56 = vector.load %arg9[%c48, %c128_28] : memref<64x256xf32, #tpu.memory_space<vmem>>, vector<8x128xf32>
    %57 = arith.addf %55, %56 : vector<8x128xf32>
    %58 = vector.extract_strided_slice %53 {offsets = [0, 0], sizes = [8, 96], strides = [1, 1]} : vector<8x128xf32> to vector<8x96xf32>
    %59 = arith.negf %58 : vector<8x96xf32>
    %60 = math.exp %59 : vector<8x96xf32>
    %cst_29 = arith.constant 1.000000e+00 : f32
    %61 = vector.broadcast %cst_29 : f32 to vector<8x96xf32>
    %62 = arith.addf %61, %60 : vector<8x96xf32>
    %63 = arith.divf %61, %62 : vector<8x96xf32>
    %64 = vector.extract_strided_slice %53 {offsets = [0, 96], sizes = [8, 32], strides = [1, 1]} : vector<8x128xf32> to vector<8x32xf32>
    %65 = math.tanh %64 : vector<8x32xf32>
    %66 = vector.extract_strided_slice %63 {offsets = [0, 32], sizes = [8, 32], strides = [1, 1]} : vector<8x96xf32> to vector<8x32xf32>
    %67 = arith.mulf %66, %28 : vector<8x32xf32>
    %68 = vector.extract_strided_slice %63 {offsets = [0, 0], sizes = [8, 32], strides = [1, 1]} : vector<8x96xf32> to vector<8x32xf32>
    %69 = arith.mulf %68, %65 : vector<8x32xf32>
    %70 = arith.addf %67, %69 : vector<8x32xf32>
    %71 = vector.extract_strided_slice %63 {offsets = [0, 64], sizes = [8, 32], strides = [1, 1]} : vector<8x96xf32> to vector<8x32xf32>
    %72 = math.tanh %70 : vector<8x32xf32>
    %73 = arith.mulf %71, %72 : vector<8x32xf32>
    %74 = vector.extract_strided_slice %57 {offsets = [0, 0], sizes = [8, 96], strides = [1, 1]} : vector<8x128xf32> to vector<8x96xf32>
    %75 = arith.negf %74 : vector<8x96xf32>
    %76 = math.exp %75 : vector<8x96xf32>
    %cst_30 = arith.constant 1.000000e+00 : f32
    %77 = vector.broadcast %cst_30 : f32 to vector<8x96xf32>
    %78 = arith.addf %77, %76 : vector<8x96xf32>
    %79 = arith.divf %77, %78 : vector<8x96xf32>
    %80 = vector.extract_strided_slice %57 {offsets = [0, 96], sizes = [8, 32], strides = [1, 1]} : vector<8x128xf32> to vector<8x32xf32>
    %81 = math.tanh %80 : vector<8x32xf32>
    %82 = vector.extract_strided_slice %79 {offsets = [0, 32], sizes = [8, 32], strides = [1, 1]} : vector<8x96xf32> to vector<8x32xf32>
    %83 = arith.mulf %82, %44 : vector<8x32xf32>
    %84 = vector.extract_strided_slice %79 {offsets = [0, 0], sizes = [8, 32], strides = [1, 1]} : vector<8x96xf32> to vector<8x32xf32>
    %85 = arith.mulf %84, %81 : vector<8x32xf32>
    %86 = arith.addf %83, %85 : vector<8x32xf32>
    %87 = vector.extract_strided_slice %79 {offsets = [0, 64], sizes = [8, 32], strides = [1, 1]} : vector<8x96xf32> to vector<8x32xf32>
    %88 = math.tanh %86 : vector<8x32xf32>
    %89 = arith.mulf %87, %88 : vector<8x32xf32>
    %c8_31 = arith.constant 8 : index
    %c0_32 = arith.constant 0 : index
    %90 = vector.load %arg10[%c8_31, %c0_32] : memref<64x64xf32, #tpu.memory_space<vmem>>, vector<8x32xf32>
    tpu.vector_store %arg10[%c8_31, %c0_32], %73 {strides = array<i32>} : memref<64x64xf32, #tpu.memory_space<vmem>>, vector<8x32xf32>,
    %c48_33 = arith.constant 48 : index
    %c32_34 = arith.constant 32 : index
    %91 = vector.load %arg10[%c48_33, %c32_34] : memref<64x64xf32, #tpu.memory_space<vmem>>, vector<8x32xf32>
    tpu.vector_store %arg10[%c48_33, %c32_34], %89 {strides = array<i32>} : memref<64x64xf32, #tpu.memory_space<vmem>>, vector<8x32xf32>,
    %c0_35 = arith.constant 0 : index
    %c0_36 = arith.constant 0 : index
    %92 = vector.load %arg4[%c0_35, %c0_36] : memref<32x128xf32, #tpu.memory_space<vmem>>, vector<32x128xf32>
    %cst_37 = arith.constant dense<0.000000e+00> : vector<8x128xf32>
    %93 = tpu.matmul %73, %92, %cst_37 {dimension_numbers = #tpu.dot_dimension_numbers<[1], [0], [0], [1], [0, 0, 1, 1], [], []>} : vector<8x32xf32>, vector<32x128xf32>, vector<8x128xf32> -> vector<8x128xf32>
    %c16 = arith.constant 16 : index
    %c0_38 = arith.constant 0 : index
    %94 = vector.load %arg9[%c16, %c0_38] : memref<64x256xf32, #tpu.memory_space<vmem>>, vector<8x128xf32>
    %95 = arith.addf %93, %94 : vector<8x128xf32>
    %c0_39 = arith.constant 0 : index
    %c0_40 = arith.constant 0 : index
    %96 = vector.load %arg5[%c0_39, %c0_40] : memref<32x128xf32, #tpu.memory_space<vmem>>, vector<32x128xf32>
    %cst_41 = arith.constant dense<0.000000e+00> : vector<8x128xf32>
    %97 = tpu.matmul %89, %96, %cst_41 {dimension_numbers = #tpu.dot_dimension_numbers<[1], [0], [0], [1], [0, 0, 1, 1], [], []>} : vector<8x32xf32>, vector<32x128xf32>, vector<8x128xf32> -> vector<8x128xf32>
    %c40 = arith.constant 40 : index
    %c128_42 = arith.constant 128 : index
    %98 = vector.load %arg9[%c40, %c128_42] : memref<64x256xf32, #tpu.memory_space<vmem>>, vector<8x128xf32>
    %99 = arith.addf %97, %98 : vector<8x128xf32>
    %100 = vector.extract_strided_slice %95 {offsets = [0, 0], sizes = [8, 96], strides = [1, 1]} : vector<8x128xf32> to vector<8x96xf32>
    %101 = arith.negf %100 : vector<8x96xf32>
    %102 = math.exp %101 : vector<8x96xf32>
    %cst_43 = arith.constant 1.000000e+00 : f32
    %103 = vector.broadcast %cst_43 : f32 to vector<8x96xf32>
    %104 = arith.addf %103, %102 : vector<8x96xf32>
    %105 = arith.divf %103, %104 : vector<8x96xf32>
    %106 = vector.extract_strided_slice %95 {offsets = [0, 96], sizes = [8, 32], strides = [1, 1]} : vector<8x128xf32> to vector<8x32xf32>
    %107 = math.tanh %106 : vector<8x32xf32>
    %108 = vector.extract_strided_slice %105 {offsets = [0, 32], sizes = [8, 32], strides = [1, 1]} : vector<8x96xf32> to vector<8x32xf32>
    %109 = arith.mulf %108, %70 : vector<8x32xf32>
    %110 = vector.extract_strided_slice %105 {offsets = [0, 0], sizes = [8, 32], strides = [1, 1]} : vector<8x96xf32> to vector<8x32xf32>
    %111 = arith.mulf %110, %107 : vector<8x32xf32>
    %112 = arith.addf %109, %111 : vector<8x32xf32>
    %113 = vector.extract_strided_slice %105 {offsets = [0, 64], sizes = [8, 32], strides = [1, 1]} : vector<8x96xf32> to vector<8x32xf32>
    %114 = math.tanh %112 : vector<8x32xf32>
    %115 = arith.mulf %113, %114 : vector<8x32xf32>
    %116 = vector.extract_strided_slice %99 {offsets = [0, 0], sizes = [8, 96], strides = [1, 1]} : vector<8x128xf32> to vector<8x96xf32>
    %117 = arith.negf %116 : vector<8x96xf32>
    %118 = math.exp %117 : vector<8x96xf32>
    %cst_44 = arith.constant 1.000000e+00 : f32
    %119 = vector.broadcast %cst_44 : f32 to vector<8x96xf32>
    %120 = arith.addf %119, %118 : vector<8x96xf32>
    %121 = arith.divf %119, %120 : vector<8x96xf32>
    %122 = vector.extract_strided_slice %99 {offsets = [0, 96], sizes = [8, 32], strides = [1, 1]} : vector<8x128xf32> to vector<8x32xf32>
    %123 = math.tanh %122 : vector<8x32xf32>
    %124 = vector.extract_strided_slice %121 {offsets = [0, 32], sizes = [8, 32], strides = [1, 1]} : vector<8x96xf32> to vector<8x32xf32>
    %125 = arith.mulf %124, %86 : vector<8x32xf32>
    %126 = vector.extract_strided_slice %121 {offsets = [0, 0], sizes = [8, 32], strides = [1, 1]} : vector<8x96xf32> to vector<8x32xf32>
    %127 = arith.mulf %126, %123 : vector<8x32xf32>
    %128 = arith.addf %125, %127 : vector<8x32xf32>
    %129 = vector.extract_strided_slice %121 {offsets = [0, 64], sizes = [8, 32], strides = [1, 1]} : vector<8x96xf32> to vector<8x32xf32>
    %130 = math.tanh %128 : vector<8x32xf32>
    %131 = arith.mulf %129, %130 : vector<8x32xf32>
    %c16_45 = arith.constant 16 : index
    %c0_46 = arith.constant 0 : index
    %132 = vector.load %arg10[%c16_45, %c0_46] : memref<64x64xf32, #tpu.memory_space<vmem>>, vector<8x32xf32>
    tpu.vector_store %arg10[%c16_45, %c0_46], %115 {strides = array<i32>} : memref<64x64xf32, #tpu.memory_space<vmem>>, vector<8x32xf32>,
    %c40_47 = arith.constant 40 : index
    %c32_48 = arith.constant 32 : index
    %133 = vector.load %arg10[%c40_47, %c32_48] : memref<64x64xf32, #tpu.memory_space<vmem>>, vector<8x32xf32>
    tpu.vector_store %arg10[%c40_47, %c32_48], %131 {strides = array<i32>} : memref<64x64xf32, #tpu.memory_space<vmem>>, vector<8x32xf32>,
    %c0_49 = arith.constant 0 : index
    %c0_50 = arith.constant 0 : index
    %134 = vector.load %arg4[%c0_49, %c0_50] : memref<32x128xf32, #tpu.memory_space<vmem>>, vector<32x128xf32>
    %cst_51 = arith.constant dense<0.000000e+00> : vector<8x128xf32>
    %135 = tpu.matmul %115, %134, %cst_51 {dimension_numbers = #tpu.dot_dimension_numbers<[1], [0], [0], [1], [0, 0, 1, 1], [], []>} : vector<8x32xf32>, vector<32x128xf32>, vector<8x128xf32> -> vector<8x128xf32>
    %c24 = arith.constant 24 : index
    %c0_52 = arith.constant 0 : index
    %136 = vector.load %arg9[%c24, %c0_52] : memref<64x256xf32, #tpu.memory_space<vmem>>, vector<8x128xf32>
    %137 = arith.addf %135, %136 : vector<8x128xf32>
    %c0_53 = arith.constant 0 : index
    %c0_54 = arith.constant 0 : index
    %138 = vector.load %arg5[%c0_53, %c0_54] : memref<32x128xf32, #tpu.memory_space<vmem>>, vector<32x128xf32>
    %cst_55 = arith.constant dense<0.000000e+00> : vector<8x128xf32>
    %139 = tpu.matmul %131, %138, %cst_55 {dimension_numbers = #tpu.dot_dimension_numbers<[1], [0], [0], [1], [0, 0, 1, 1], [], []>} : vector<8x32xf32>, vector<32x128xf32>, vector<8x128xf32> -> vector<8x128xf32>
    %c32_56 = arith.constant 32 : index
    %c128_57 = arith.constant 128 : index
    %140 = vector.load %arg9[%c32_56, %c128_57] : memref<64x256xf32, #tpu.memory_space<vmem>>, vector<8x128xf32>
    %141 = arith.addf %139, %140 : vector<8x128xf32>
    %142 = vector.extract_strided_slice %137 {offsets = [0, 0], sizes = [8, 96], strides = [1, 1]} : vector<8x128xf32> to vector<8x96xf32>
    %143 = arith.negf %142 : vector<8x96xf32>
    %144 = math.exp %143 : vector<8x96xf32>
    %cst_58 = arith.constant 1.000000e+00 : f32
    %145 = vector.broadcast %cst_58 : f32 to vector<8x96xf32>
    %146 = arith.addf %145, %144 : vector<8x96xf32>
    %147 = arith.divf %145, %146 : vector<8x96xf32>
    %148 = vector.extract_strided_slice %137 {offsets = [0, 96], sizes = [8, 32], strides = [1, 1]} : vector<8x128xf32> to vector<8x32xf32>
    %149 = math.tanh %148 : vector<8x32xf32>
    %150 = vector.extract_strided_slice %147 {offsets = [0, 32], sizes = [8, 32], strides = [1, 1]} : vector<8x96xf32> to vector<8x32xf32>
    %151 = arith.mulf %150, %112 : vector<8x32xf32>
    %152 = vector.extract_strided_slice %147 {offsets = [0, 0], sizes = [8, 32], strides = [1, 1]} : vector<8x96xf32> to vector<8x32xf32>
    %153 = arith.mulf %152, %149 : vector<8x32xf32>
    %154 = arith.addf %151, %153 : vector<8x32xf32>
    %155 = vector.extract_strided_slice %147 {offsets = [0, 64], sizes = [8, 32], strides = [1, 1]} : vector<8x96xf32> to vector<8x32xf32>
    %156 = math.tanh %154 : vector<8x32xf32>
    %157 = arith.mulf %155, %156 : vector<8x32xf32>
    %158 = vector.extract_strided_slice %141 {offsets = [0, 0], sizes = [8, 96], strides = [1, 1]} : vector<8x128xf32> to vector<8x96xf32>
    %159 = arith.negf %158 : vector<8x96xf32>
    %160 = math.exp %159 : vector<8x96xf32>
    %cst_59 = arith.constant 1.000000e+00 : f32
    %161 = vector.broadcast %cst_59 : f32 to vector<8x96xf32>
    %162 = arith.addf %161, %160 : vector<8x96xf32>
    %163 = arith.divf %161, %162 : vector<8x96xf32>
    %164 = vector.extract_strided_slice %141 {offsets = [0, 96], sizes = [8, 32], strides = [1, 1]} : vector<8x128xf32> to vector<8x32xf32>
    %165 = math.tanh %164 : vector<8x32xf32>
    %166 = vector.extract_strided_slice %163 {offsets = [0, 32], sizes = [8, 32], strides = [1, 1]} : vector<8x96xf32> to vector<8x32xf32>
    %167 = arith.mulf %166, %128 : vector<8x32xf32>
    %168 = vector.extract_strided_slice %163 {offsets = [0, 0], sizes = [8, 32], strides = [1, 1]} : vector<8x96xf32> to vector<8x32xf32>
    %169 = arith.mulf %168, %165 : vector<8x32xf32>
    %170 = arith.addf %167, %169 : vector<8x32xf32>
    %171 = vector.extract_strided_slice %163 {offsets = [0, 64], sizes = [8, 32], strides = [1, 1]} : vector<8x96xf32> to vector<8x32xf32>
    %172 = math.tanh %170 : vector<8x32xf32>
    %173 = arith.mulf %171, %172 : vector<8x32xf32>
    %c24_60 = arith.constant 24 : index
    %c0_61 = arith.constant 0 : index
    %174 = vector.load %arg10[%c24_60, %c0_61] : memref<64x64xf32, #tpu.memory_space<vmem>>, vector<8x32xf32>
    tpu.vector_store %arg10[%c24_60, %c0_61], %157 {strides = array<i32>} : memref<64x64xf32, #tpu.memory_space<vmem>>, vector<8x32xf32>,
    %c32_62 = arith.constant 32 : index
    %c32_63 = arith.constant 32 : index
    %175 = vector.load %arg10[%c32_62, %c32_63] : memref<64x64xf32, #tpu.memory_space<vmem>>, vector<8x32xf32>
    tpu.vector_store %arg10[%c32_62, %c32_63], %173 {strides = array<i32>} : memref<64x64xf32, #tpu.memory_space<vmem>>, vector<8x32xf32>,
    %c0_64 = arith.constant 0 : index
    %c0_65 = arith.constant 0 : index
    %176 = vector.load %arg4[%c0_64, %c0_65] : memref<32x128xf32, #tpu.memory_space<vmem>>, vector<32x128xf32>
    %cst_66 = arith.constant dense<0.000000e+00> : vector<8x128xf32>
    %177 = tpu.matmul %157, %176, %cst_66 {dimension_numbers = #tpu.dot_dimension_numbers<[1], [0], [0], [1], [0, 0, 1, 1], [], []>} : vector<8x32xf32>, vector<32x128xf32>, vector<8x128xf32> -> vector<8x128xf32>
    %c32_67 = arith.constant 32 : index
    %c0_68 = arith.constant 0 : index
    %178 = vector.load %arg9[%c32_67, %c0_68] : memref<64x256xf32, #tpu.memory_space<vmem>>, vector<8x128xf32>
    %179 = arith.addf %177, %178 : vector<8x128xf32>
    %c0_69 = arith.constant 0 : index
    %c0_70 = arith.constant 0 : index
    %180 = vector.load %arg5[%c0_69, %c0_70] : memref<32x128xf32, #tpu.memory_space<vmem>>, vector<32x128xf32>
    %cst_71 = arith.constant dense<0.000000e+00> : vector<8x128xf32>
    %181 = tpu.matmul %173, %180, %cst_71 {dimension_numbers = #tpu.dot_dimension_numbers<[1], [0], [0], [1], [0, 0, 1, 1], [], []>} : vector<8x32xf32>, vector<32x128xf32>, vector<8x128xf32> -> vector<8x128xf32>
    %c24_72 = arith.constant 24 : index
    %c128_73 = arith.constant 128 : index
    %182 = vector.load %arg9[%c24_72, %c128_73] : memref<64x256xf32, #tpu.memory_space<vmem>>, vector<8x128xf32>
    %183 = arith.addf %181, %182 : vector<8x128xf32>
    %184 = vector.extract_strided_slice %179 {offsets = [0, 0], sizes = [8, 96], strides = [1, 1]} : vector<8x128xf32> to vector<8x96xf32>
    %185 = arith.negf %184 : vector<8x96xf32>
    %186 = math.exp %185 : vector<8x96xf32>
    %cst_74 = arith.constant 1.000000e+00 : f32
    %187 = vector.broadcast %cst_74 : f32 to vector<8x96xf32>
    %188 = arith.addf %187, %186 : vector<8x96xf32>
    %189 = arith.divf %187, %188 : vector<8x96xf32>
    %190 = vector.extract_strided_slice %179 {offsets = [0, 96], sizes = [8, 32], strides = [1, 1]} : vector<8x128xf32> to vector<8x32xf32>
    %191 = math.tanh %190 : vector<8x32xf32>
    %192 = vector.extract_strided_slice %189 {offsets = [0, 32], sizes = [8, 32], strides = [1, 1]} : vector<8x96xf32> to vector<8x32xf32>
    %193 = arith.mulf %192, %154 : vector<8x32xf32>
    %194 = vector.extract_strided_slice %189 {offsets = [0, 0], sizes = [8, 32], strides = [1, 1]} : vector<8x96xf32> to vector<8x32xf32>
    %195 = arith.mulf %194, %191 : vector<8x32xf32>
    %196 = arith.addf %193, %195 : vector<8x32xf32>
    %197 = vector.extract_strided_slice %189 {offsets = [0, 64], sizes = [8, 32], strides = [1, 1]} : vector<8x96xf32> to vector<8x32xf32>
    %198 = math.tanh %196 : vector<8x32xf32>
    %199 = arith.mulf %197, %198 : vector<8x32xf32>
    %200 = vector.extract_strided_slice %183 {offsets = [0, 0], sizes = [8, 96], strides = [1, 1]} : vector<8x128xf32> to vector<8x96xf32>
    %201 = arith.negf %200 : vector<8x96xf32>
    %202 = math.exp %201 : vector<8x96xf32>
    %cst_75 = arith.constant 1.000000e+00 : f32
    %203 = vector.broadcast %cst_75 : f32 to vector<8x96xf32>
    %204 = arith.addf %203, %202 : vector<8x96xf32>
    %205 = arith.divf %203, %204 : vector<8x96xf32>
    %206 = vector.extract_strided_slice %183 {offsets = [0, 96], sizes = [8, 32], strides = [1, 1]} : vector<8x128xf32> to vector<8x32xf32>
    %207 = math.tanh %206 : vector<8x32xf32>
    %208 = vector.extract_strided_slice %205 {offsets = [0, 32], sizes = [8, 32], strides = [1, 1]} : vector<8x96xf32> to vector<8x32xf32>
    %209 = arith.mulf %208, %170 : vector<8x32xf32>
    %210 = vector.extract_strided_slice %205 {offsets = [0, 0], sizes = [8, 32], strides = [1, 1]} : vector<8x96xf32> to vector<8x32xf32>
    %211 = arith.mulf %210, %207 : vector<8x32xf32>
    %212 = arith.addf %209, %211 : vector<8x32xf32>
    %213 = vector.extract_strided_slice %205 {offsets = [0, 64], sizes = [8, 32], strides = [1, 1]} : vector<8x96xf32> to vector<8x32xf32>
    %214 = math.tanh %212 : vector<8x32xf32>
    %215 = arith.mulf %213, %214 : vector<8x32xf32>
    %c32_76 = arith.constant 32 : index
    %c0_77 = arith.constant 0 : index
    %216 = vector.load %arg10[%c32_76, %c0_77] : memref<64x64xf32, #tpu.memory_space<vmem>>, vector<8x32xf32>
    tpu.vector_store %arg10[%c32_76, %c0_77], %199 {strides = array<i32>} : memref<64x64xf32, #tpu.memory_space<vmem>>, vector<8x32xf32>,
    %c24_78 = arith.constant 24 : index
    %c32_79 = arith.constant 32 : index
    %217 = vector.load %arg10[%c24_78, %c32_79] : memref<64x64xf32, #tpu.memory_space<vmem>>, vector<8x32xf32>
    tpu.vector_store %arg10[%c24_78, %c32_79], %215 {strides = array<i32>} : memref<64x64xf32, #tpu.memory_space<vmem>>, vector<8x32xf32>,
    %c0_80 = arith.constant 0 : index
    %c0_81 = arith.constant 0 : index
    %218 = vector.load %arg4[%c0_80, %c0_81] : memref<32x128xf32, #tpu.memory_space<vmem>>, vector<32x128xf32>
    %cst_82 = arith.constant dense<0.000000e+00> : vector<8x128xf32>
    %219 = tpu.matmul %199, %218, %cst_82 {dimension_numbers = #tpu.dot_dimension_numbers<[1], [0], [0], [1], [0, 0, 1, 1], [], []>} : vector<8x32xf32>, vector<32x128xf32>, vector<8x128xf32> -> vector<8x128xf32>
    %c40_83 = arith.constant 40 : index
    %c0_84 = arith.constant 0 : index
    %220 = vector.load %arg9[%c40_83, %c0_84] : memref<64x256xf32, #tpu.memory_space<vmem>>, vector<8x128xf32>
    %221 = arith.addf %219, %220 : vector<8x128xf32>
    %c0_85 = arith.constant 0 : index
    %c0_86 = arith.constant 0 : index
    %222 = vector.load %arg5[%c0_85, %c0_86] : memref<32x128xf32, #tpu.memory_space<vmem>>, vector<32x128xf32>
    %cst_87 = arith.constant dense<0.000000e+00> : vector<8x128xf32>
    %223 = tpu.matmul %215, %222, %cst_87 {dimension_numbers = #tpu.dot_dimension_numbers<[1], [0], [0], [1], [0, 0, 1, 1], [], []>} : vector<8x32xf32>, vector<32x128xf32>, vector<8x128xf32> -> vector<8x128xf32>
    %c16_88 = arith.constant 16 : index
    %c128_89 = arith.constant 128 : index
    %224 = vector.load %arg9[%c16_88, %c128_89] : memref<64x256xf32, #tpu.memory_space<vmem>>, vector<8x128xf32>
    %225 = arith.addf %223, %224 : vector<8x128xf32>
    %226 = vector.extract_strided_slice %221 {offsets = [0, 0], sizes = [8, 96], strides = [1, 1]} : vector<8x128xf32> to vector<8x96xf32>
    %227 = arith.negf %226 : vector<8x96xf32>
    %228 = math.exp %227 : vector<8x96xf32>
    %cst_90 = arith.constant 1.000000e+00 : f32
    %229 = vector.broadcast %cst_90 : f32 to vector<8x96xf32>
    %230 = arith.addf %229, %228 : vector<8x96xf32>
    %231 = arith.divf %229, %230 : vector<8x96xf32>
    %232 = vector.extract_strided_slice %221 {offsets = [0, 96], sizes = [8, 32], strides = [1, 1]} : vector<8x128xf32> to vector<8x32xf32>
    %233 = math.tanh %232 : vector<8x32xf32>
    %234 = vector.extract_strided_slice %231 {offsets = [0, 32], sizes = [8, 32], strides = [1, 1]} : vector<8x96xf32> to vector<8x32xf32>
    %235 = arith.mulf %234, %196 : vector<8x32xf32>
    %236 = vector.extract_strided_slice %231 {offsets = [0, 0], sizes = [8, 32], strides = [1, 1]} : vector<8x96xf32> to vector<8x32xf32>
    %237 = arith.mulf %236, %233 : vector<8x32xf32>
    %238 = arith.addf %235, %237 : vector<8x32xf32>
    %239 = vector.extract_strided_slice %231 {offsets = [0, 64], sizes = [8, 32], strides = [1, 1]} : vector<8x96xf32> to vector<8x32xf32>
    %240 = math.tanh %238 : vector<8x32xf32>
    %241 = arith.mulf %239, %240 : vector<8x32xf32>
    %242 = vector.extract_strided_slice %225 {offsets = [0, 0], sizes = [8, 96], strides = [1, 1]} : vector<8x128xf32> to vector<8x96xf32>
    %243 = arith.negf %242 : vector<8x96xf32>
    %244 = math.exp %243 : vector<8x96xf32>
    %cst_91 = arith.constant 1.000000e+00 : f32
    %245 = vector.broadcast %cst_91 : f32 to vector<8x96xf32>
    %246 = arith.addf %245, %244 : vector<8x96xf32>
    %247 = arith.divf %245, %246 : vector<8x96xf32>
    %248 = vector.extract_strided_slice %225 {offsets = [0, 96], sizes = [8, 32], strides = [1, 1]} : vector<8x128xf32> to vector<8x32xf32>
    %249 = math.tanh %248 : vector<8x32xf32>
    %250 = vector.extract_strided_slice %247 {offsets = [0, 32], sizes = [8, 32], strides = [1, 1]} : vector<8x96xf32> to vector<8x32xf32>
    %251 = arith.mulf %250, %212 : vector<8x32xf32>
    %252 = vector.extract_strided_slice %247 {offsets = [0, 0], sizes = [8, 32], strides = [1, 1]} : vector<8x96xf32> to vector<8x32xf32>
    %253 = arith.mulf %252, %249 : vector<8x32xf32>
    %254 = arith.addf %251, %253 : vector<8x32xf32>
    %255 = vector.extract_strided_slice %247 {offsets = [0, 64], sizes = [8, 32], strides = [1, 1]} : vector<8x96xf32> to vector<8x32xf32>
    %256 = math.tanh %254 : vector<8x32xf32>
    %257 = arith.mulf %255, %256 : vector<8x32xf32>
    %c40_92 = arith.constant 40 : index
    %c0_93 = arith.constant 0 : index
    %258 = vector.load %arg10[%c40_92, %c0_93] : memref<64x64xf32, #tpu.memory_space<vmem>>, vector<8x32xf32>
    tpu.vector_store %arg10[%c40_92, %c0_93], %241 {strides = array<i32>} : memref<64x64xf32, #tpu.memory_space<vmem>>, vector<8x32xf32>,
    %c16_94 = arith.constant 16 : index
    %c32_95 = arith.constant 32 : index
    %259 = vector.load %arg10[%c16_94, %c32_95] : memref<64x64xf32, #tpu.memory_space<vmem>>, vector<8x32xf32>
    tpu.vector_store %arg10[%c16_94, %c32_95], %257 {strides = array<i32>} : memref<64x64xf32, #tpu.memory_space<vmem>>, vector<8x32xf32>,
    %c0_96 = arith.constant 0 : index
    %c0_97 = arith.constant 0 : index
    %260 = vector.load %arg4[%c0_96, %c0_97] : memref<32x128xf32, #tpu.memory_space<vmem>>, vector<32x128xf32>
    %cst_98 = arith.constant dense<0.000000e+00> : vector<8x128xf32>
    %261 = tpu.matmul %241, %260, %cst_98 {dimension_numbers = #tpu.dot_dimension_numbers<[1], [0], [0], [1], [0, 0, 1, 1], [], []>} : vector<8x32xf32>, vector<32x128xf32>, vector<8x128xf32> -> vector<8x128xf32>
    %c48_99 = arith.constant 48 : index
    %c0_100 = arith.constant 0 : index
    %262 = vector.load %arg9[%c48_99, %c0_100] : memref<64x256xf32, #tpu.memory_space<vmem>>, vector<8x128xf32>
    %263 = arith.addf %261, %262 : vector<8x128xf32>
    %c0_101 = arith.constant 0 : index
    %c0_102 = arith.constant 0 : index
    %264 = vector.load %arg5[%c0_101, %c0_102] : memref<32x128xf32, #tpu.memory_space<vmem>>, vector<32x128xf32>
    %cst_103 = arith.constant dense<0.000000e+00> : vector<8x128xf32>
    %265 = tpu.matmul %257, %264, %cst_103 {dimension_numbers = #tpu.dot_dimension_numbers<[1], [0], [0], [1], [0, 0, 1, 1], [], []>} : vector<8x32xf32>, vector<32x128xf32>, vector<8x128xf32> -> vector<8x128xf32>
    %c8_104 = arith.constant 8 : index
    %c128_105 = arith.constant 128 : index
    %266 = vector.load %arg9[%c8_104, %c128_105] : memref<64x256xf32, #tpu.memory_space<vmem>>, vector<8x128xf32>
    %267 = arith.addf %265, %266 : vector<8x128xf32>
    %268 = vector.extract_strided_slice %263 {offsets = [0, 0], sizes = [8, 96], strides = [1, 1]} : vector<8x128xf32> to vector<8x96xf32>
    %269 = arith.negf %268 : vector<8x96xf32>
    %270 = math.exp %269 : vector<8x96xf32>
    %cst_106 = arith.constant 1.000000e+00 : f32
    %271 = vector.broadcast %cst_106 : f32 to vector<8x96xf32>
    %272 = arith.addf %271, %270 : vector<8x96xf32>
    %273 = arith.divf %271, %272 : vector<8x96xf32>
    %274 = vector.extract_strided_slice %263 {offsets = [0, 96], sizes = [8, 32], strides = [1, 1]} : vector<8x128xf32> to vector<8x32xf32>
    %275 = math.tanh %274 : vector<8x32xf32>
    %276 = vector.extract_strided_slice %273 {offsets = [0, 32], sizes = [8, 32], strides = [1, 1]} : vector<8x96xf32> to vector<8x32xf32>
    %277 = arith.mulf %276, %238 : vector<8x32xf32>
    %278 = vector.extract_strided_slice %273 {offsets = [0, 0], sizes = [8, 32], strides = [1, 1]} : vector<8x96xf32> to vector<8x32xf32>
    %279 = arith.mulf %278, %275 : vector<8x32xf32>
    %280 = arith.addf %277, %279 : vector<8x32xf32>
    %281 = vector.extract_strided_slice %273 {offsets = [0, 64], sizes = [8, 32], strides = [1, 1]} : vector<8x96xf32> to vector<8x32xf32>
    %282 = math.tanh %280 : vector<8x32xf32>
    %283 = arith.mulf %281, %282 : vector<8x32xf32>
    %284 = vector.extract_strided_slice %267 {offsets = [0, 0], sizes = [8, 96], strides = [1, 1]} : vector<8x128xf32> to vector<8x96xf32>
    %285 = arith.negf %284 : vector<8x96xf32>
    %286 = math.exp %285 : vector<8x96xf32>
    %cst_107 = arith.constant 1.000000e+00 : f32
    %287 = vector.broadcast %cst_107 : f32 to vector<8x96xf32>
    %288 = arith.addf %287, %286 : vector<8x96xf32>
    %289 = arith.divf %287, %288 : vector<8x96xf32>
    %290 = vector.extract_strided_slice %267 {offsets = [0, 96], sizes = [8, 32], strides = [1, 1]} : vector<8x128xf32> to vector<8x32xf32>
    %291 = math.tanh %290 : vector<8x32xf32>
    %292 = vector.extract_strided_slice %289 {offsets = [0, 32], sizes = [8, 32], strides = [1, 1]} : vector<8x96xf32> to vector<8x32xf32>
    %293 = arith.mulf %292, %254 : vector<8x32xf32>
    %294 = vector.extract_strided_slice %289 {offsets = [0, 0], sizes = [8, 32], strides = [1, 1]} : vector<8x96xf32> to vector<8x32xf32>
    %295 = arith.mulf %294, %291 : vector<8x32xf32>
    %296 = arith.addf %293, %295 : vector<8x32xf32>
    %297 = vector.extract_strided_slice %289 {offsets = [0, 64], sizes = [8, 32], strides = [1, 1]} : vector<8x96xf32> to vector<8x32xf32>
    %298 = math.tanh %296 : vector<8x32xf32>
    %299 = arith.mulf %297, %298 : vector<8x32xf32>
    %c48_108 = arith.constant 48 : index
    %c0_109 = arith.constant 0 : index
    %300 = vector.load %arg10[%c48_108, %c0_109] : memref<64x64xf32, #tpu.memory_space<vmem>>, vector<8x32xf32>
    tpu.vector_store %arg10[%c48_108, %c0_109], %283 {strides = array<i32>} : memref<64x64xf32, #tpu.memory_space<vmem>>, vector<8x32xf32>,
    %c8_110 = arith.constant 8 : index
    %c32_111 = arith.constant 32 : index
    %301 = vector.load %arg10[%c8_110, %c32_111] : memref<64x64xf32, #tpu.memory_space<vmem>>, vector<8x32xf32>
    tpu.vector_store %arg10[%c8_110, %c32_111], %299 {strides = array<i32>} : memref<64x64xf32, #tpu.memory_space<vmem>>, vector<8x32xf32>,
    %c0_112 = arith.constant 0 : index
    %c0_113 = arith.constant 0 : index
    %302 = vector.load %arg4[%c0_112, %c0_113] : memref<32x128xf32, #tpu.memory_space<vmem>>, vector<32x128xf32>
    %cst_114 = arith.constant dense<0.000000e+00> : vector<8x128xf32>
    %303 = tpu.matmul %283, %302, %cst_114 {dimension_numbers = #tpu.dot_dimension_numbers<[1], [0], [0], [1], [0, 0, 1, 1], [], []>} : vector<8x32xf32>, vector<32x128xf32>, vector<8x128xf32> -> vector<8x128xf32>
    %c56_115 = arith.constant 56 : index
    %c0_116 = arith.constant 0 : index
    %304 = vector.load %arg9[%c56_115, %c0_116] : memref<64x256xf32, #tpu.memory_space<vmem>>, vector<8x128xf32>
    %305 = arith.addf %303, %304 : vector<8x128xf32>
    %c0_117 = arith.constant 0 : index
    %c0_118 = arith.constant 0 : index
    %306 = vector.load %arg5[%c0_117, %c0_118] : memref<32x128xf32, #tpu.memory_space<vmem>>, vector<32x128xf32>
    %cst_119 = arith.constant dense<0.000000e+00> : vector<8x128xf32>
    %307 = tpu.matmul %299, %306, %cst_119 {dimension_numbers = #tpu.dot_dimension_numbers<[1], [0], [0], [1], [0, 0, 1, 1], [], []>} : vector<8x32xf32>, vector<32x128xf32>, vector<8x128xf32> -> vector<8x128xf32>
    %c0_120 = arith.constant 0 : index
    %c128_121 = arith.constant 128 : index
    %308 = vector.load %arg9[%c0_120, %c128_121] : memref<64x256xf32, #tpu.memory_space<vmem>>, vector<8x128xf32>
    %309 = arith.addf %307, %308 : vector<8x128xf32>
    %310 = vector.extract_strided_slice %305 {offsets = [0, 0], sizes = [8, 96], strides = [1, 1]} : vector<8x128xf32> to vector<8x96xf32>
    %311 = arith.negf %310 : vector<8x96xf32>
    %312 = math.exp %311 : vector<8x96xf32>
    %cst_122 = arith.constant 1.000000e+00 : f32
    %313 = vector.broadcast %cst_122 : f32 to vector<8x96xf32>
    %314 = arith.addf %313, %312 : vector<8x96xf32>
    %315 = arith.divf %313, %314 : vector<8x96xf32>
    %316 = vector.extract_strided_slice %305 {offsets = [0, 96], sizes = [8, 32], strides = [1, 1]} : vector<8x128xf32> to vector<8x32xf32>
    %317 = math.tanh %316 : vector<8x32xf32>
    %318 = vector.extract_strided_slice %315 {offsets = [0, 32], sizes = [8, 32], strides = [1, 1]} : vector<8x96xf32> to vector<8x32xf32>
    %319 = arith.mulf %318, %280 : vector<8x32xf32>
    %320 = vector.extract_strided_slice %315 {offsets = [0, 0], sizes = [8, 32], strides = [1, 1]} : vector<8x96xf32> to vector<8x32xf32>
    %321 = arith.mulf %320, %317 : vector<8x32xf32>
    %322 = arith.addf %319, %321 : vector<8x32xf32>
    %323 = vector.extract_strided_slice %315 {offsets = [0, 64], sizes = [8, 32], strides = [1, 1]} : vector<8x96xf32> to vector<8x32xf32>
    %324 = math.tanh %322 : vector<8x32xf32>
    %325 = arith.mulf %323, %324 : vector<8x32xf32>
    %326 = vector.extract_strided_slice %309 {offsets = [0, 0], sizes = [8, 96], strides = [1, 1]} : vector<8x128xf32> to vector<8x96xf32>
    %327 = arith.negf %326 : vector<8x96xf32>
    %328 = math.exp %327 : vector<8x96xf32>
    %cst_123 = arith.constant 1.000000e+00 : f32
    %329 = vector.broadcast %cst_123 : f32 to vector<8x96xf32>
    %330 = arith.addf %329, %328 : vector<8x96xf32>
    %331 = arith.divf %329, %330 : vector<8x96xf32>
    %332 = vector.extract_strided_slice %309 {offsets = [0, 96], sizes = [8, 32], strides = [1, 1]} : vector<8x128xf32> to vector<8x32xf32>
    %333 = math.tanh %332 : vector<8x32xf32>
    %334 = vector.extract_strided_slice %331 {offsets = [0, 32], sizes = [8, 32], strides = [1, 1]} : vector<8x96xf32> to vector<8x32xf32>
    %335 = arith.mulf %334, %296 : vector<8x32xf32>
    %336 = vector.extract_strided_slice %331 {offsets = [0, 0], sizes = [8, 32], strides = [1, 1]} : vector<8x96xf32> to vector<8x32xf32>
    %337 = arith.mulf %336, %333 : vector<8x32xf32>
    %338 = arith.addf %335, %337 : vector<8x32xf32>
    %339 = vector.extract_strided_slice %331 {offsets = [0, 64], sizes = [8, 32], strides = [1, 1]} : vector<8x96xf32> to vector<8x32xf32>
    %340 = math.tanh %338 : vector<8x32xf32>
    %341 = arith.mulf %339, %340 : vector<8x32xf32>
    %c56_124 = arith.constant 56 : index
    %c0_125 = arith.constant 0 : index
    %342 = vector.load %arg10[%c56_124, %c0_125] : memref<64x64xf32, #tpu.memory_space<vmem>>, vector<8x32xf32>
    tpu.vector_store %arg10[%c56_124, %c0_125], %325 {strides = array<i32>} : memref<64x64xf32, #tpu.memory_space<vmem>>, vector<8x32xf32>,
    %c0_126 = arith.constant 0 : index
    %c32_127 = arith.constant 32 : index
    %343 = vector.load %arg10[%c0_126, %c32_127] : memref<64x64xf32, #tpu.memory_space<vmem>>, vector<8x32xf32>
    tpu.vector_store %arg10[%c0_126, %c32_127], %341 {strides = array<i32>} : memref<64x64xf32, #tpu.memory_space<vmem>>, vector<8x32xf32>,
    %c0_128 = arith.constant 0 : index
    %c0_129 = arith.constant 0 : index
    %344 = vector.load %arg10[%c0_128, %c0_129] : memref<64x64xf32, #tpu.memory_space<vmem>>, vector<64x64xf32>
    %c0_130 = arith.constant 0 : index
    %c0_131 = arith.constant 0 : index
    %345 = vector.load %arg6[%c0_130, %c0_131] : memref<64x16xf32, #tpu.memory_space<vmem>>, vector<64x16xf32>
    %cst_132 = arith.constant dense<0.000000e+00> : vector<64x16xf32>
    %346 = tpu.matmul %344, %345, %cst_132 {dimension_numbers = #tpu.dot_dimension_numbers<[1], [0], [0], [1], [0, 0, 1, 1], [], []>} : vector<64x64xf32>, vector<64x16xf32>, vector<64x16xf32> -> vector<64x16xf32>
    %c0_133 = arith.constant 0 : index
    %c0_134 = arith.constant 0 : index
    %347 = vector.load %arg7[%c0_133, %c0_134] : memref<1x16xf32, #tpu.memory_space<vmem>>, vector<1x16xf32>
    %348 = vector.broadcast %347 : vector<1x16xf32> to vector<64x16xf32>
    %349 = arith.addf %346, %348 : vector<64x16xf32>
    %c0_135 = arith.constant 0 : index
    %c0_136 = arith.constant 0 : index
    %350 = vector.load %arg8[%c0_135, %c0_136] : memref<64x16xf32, #tpu.memory_space<vmem>>, vector<64x16xf32>
    tpu.vector_store %arg8[%c0_135, %c0_136], %349 {strides = array<i32>} : memref<64x16xf32, #tpu.memory_space<vmem>>, vector<64x16xf32>,
    return
  }
  func.func @transform_0(%arg0: i32) -> (i32, i32) {
    %c0_i32 = arith.constant 0 : i32
    %c0_i32_0 = arith.constant 0 : i32
    %c0_i32_1 = arith.constant 0 : i32
    return %c0_i32, %c0_i32_0 : i32, i32
  }
  func.func @transform_1(%arg0: i32) -> (i32, i32) {
    %c0_i32 = arith.constant 0 : i32
    %c0_i32_0 = arith.constant 0 : i32
    %c0_i32_1 = arith.constant 0 : i32
    return %c0_i32, %c0_i32_0 : i32, i32
  }
  func.func @transform_2(%arg0: i32) -> (i32, i32) {
    %c0_i32 = arith.constant 0 : i32
    %c0_i32_0 = arith.constant 0 : i32
    %c0_i32_1 = arith.constant 0 : i32
    return %c0_i32, %c0_i32_0 : i32, i32
  }
  func.func @transform_3(%arg0: i32) -> (i32, i32) {
    %c0_i32 = arith.constant 0 : i32
    %c0_i32_0 = arith.constant 0 : i32
    %c0_i32_1 = arith.constant 0 : i32
    return %c0_i32, %c0_i32_0 : i32, i32
  }
  func.func @transform_4(%arg0: i32) -> (i32, i32) {
    %c0_i32 = arith.constant 0 : i32
    %c0_i32_0 = arith.constant 0 : i32
    %c0_i32_1 = arith.constant 0 : i32
    return %c0_i32, %c0_i32_0 : i32, i32
  }
  func.func @transform_5(%arg0: i32) -> (i32, i32) {
    %c0_i32 = arith.constant 0 : i32
    %c0_i32_0 = arith.constant 0 : i32
    %c0_i32_1 = arith.constant 0 : i32
    return %c0_i32, %c0_i32_0 : i32, i32
  }
  func.func @transform_6(%arg0: i32) -> (i32, i32) {
    %c0_i32 = arith.constant 0 : i32
    %c0_i32_0 = arith.constant 0 : i32
    %c0_i32_1 = arith.constant 0 : i32
    return %c0_i32, %c0_i32_0 : i32, i32
  }
  func.func @transform_7(%arg0: i32) -> (i32, i32) {
    %c0_i32 = arith.constant 0 : i32
    %c0_i32_0 = arith.constant 0 : i32
    %c0_i32_1 = arith.constant 0 : i32
    return %c0_i32, %c0_i32_0 : i32, i32
  }
}

</mosaic_0001>

<bundles_post_ra>
// kernel: bidirectional_lstm.1
= control target key start
LH: loop header
LB: loop body
LE: loop exit
PB: predicated region body
PF: predicated region fallthrough
CT: control target
= control target key end

     0   :  { %v2679_v3 = vmov 0.0   ;;  %vm50_vm0 = vcmask 130048   ;;  %v2680_v12 = vmov 0.0|0.0   ;;  %vm2681_vm1 = vmmov 0   ;;  %s2683_s13 = smov 64   ;;  %s3235_s1 = inlined_call_operand.vmem [shape: f32[16,256], index: 1, kind: input, shape index: {}]   ;;  %s3236_s3 = inlined_call_operand.vmem [shape: f32[32,128], index: 3, kind: input, shape index: {}]   ;;  %s3237_s0 = inlined_call_operand.vmem [shape: f32[64,16], index: 0, kind: input, shape index: {}]   ;;  %s3238_s4 = inlined_call_operand.vmem [shape: f32[32,128], index: 4, kind: input, shape index: {}]   ;;  %s3239_s2 = inlined_call_operand.vmem [shape: f32[1,256], index: 2, kind: input, shape index: {}]   ;;  %s3240_s5 = inlined_call_operand.vmem [shape: f32[64,16], index: 5, kind: input, shape index: {}]   ;;  %s3241_s6 = inlined_call_operand.vmem [shape: f32[1,16], index: 6, kind: input, shape index: {}]   ;;  %s3242_s7 = inlined_call_operand.vmem [shape: f32[64,16], index: 7, kind: output, shape index: {}]  }
   0x1   :  { %v35_v0 = vld [vmem:[%s3235_s1 + $0x8] sm:$0xff]  ;;  %v37_v1 = vld [vmem:[%s3235_s1 + $0x18] sm:$0xff]  ;;  %v34_v2 = vld [vmem:[%s3235_s1] sm:$0xff]  ;;  %169 = vmatprep.mubr.f32.mxu1 %v2679_v3  ;;  %139 = vmatprep.mubr.f32.mxu0 %v2679_v3  ;;  %v40_v24 = vlaneseq  ;;  %vm209_vm2 = vcmask 261120   ;;  %vm415_vm3 = vcmask 523520   ;;  %vm1938_vm4 = vcmask 523264  }
   0x2   :  { %v2427_v4 = vpack.c.bf16 %v37_v1, %v35_v0  ;;  %v36_v5 = vld [vmem:[%s3235_s1 + $0x10] sm:$0xff]  ;;  %v204_v6 = vld [vmem:[%s3236_s3] sm:$0xff]  ;;  %v205_v8 = vld [vmem:[%s3236_s3 + $0x8] sm:$0xff] }
   0x3   :  { %v2429_v7 = vpack.c.bf16 %v36_v5, %v34_v2  ;;  %v31_v9 = vld [vmem:[%s3237_s0 + $0x28] sm:$0xff]  ;;  %v2748_v10 = vpack.c.bf16 %v205_v8, %v204_v6  ;;  %v26_v11 = vld [vmem:[%s3237_s0] sm:$0xff]  ;;  %v206_v13 = vld [vmem:[%s3236_s3 + $0x10] sm:$0xff]  ;;  %v41_v25 = vshrl.u32 %v40_v24, 7 }
   0x4   :  { %2543 = vmatprep.subr.bf16.mxu1 %v2427_v4  ;;  %2428 = vmatprep.subr.bf16.mxu0 %v2427_v4  ;;  %v207_v14 = vld [vmem:[%s3236_s3 + $0x18] sm:$0xff]  ;;  %v32_v15 = vld [vmem:[%s3237_s0 + $0x30] sm:$0xff]  ;;  %v283_v18 = vld [vmem:[%s3238_s4] sm:$0xff] }
   0x5   :  { %2544 = vmatpush1.bf16.msra.mxu1 %v2429_v7  ;;  %2430 = vmatpush1.bf16.msra.mxu0 %v2429_v7  ;;  %v2768_v16 = vpack.c.bf16 %v207_v14, %v206_v13  ;;  %v33_v17 = vld [vmem:[%s3237_s0 + $0x38] sm:$0xff]  ;;  %v284_v19 = vld [vmem:[%s3238_s4 + $0x8] sm:$0xff]  ;;  %v285_v21 = vld [vmem:[%s3238_s4 + $0x10] sm:$0xff]  ;;  %v42_v30 = vsub.s32 0, %v41_v25  ;;  %v46_v39 = vsub.s32 1, %v41_v25 }
   0x6   :  { %2431 = vmatprep.subr.bf16.mxu1 %v2680_v12  ;;  %2455 = vmatprep.subr.bf16.mxu0 %v2680_v12  ;;  %v2792_v20 = vpack.c.bf16 %v284_v19, %v283_v18  ;;  %v286_v22 = vld [vmem:[%s3238_s4 + $0x18] sm:$0xff]  ;;  %v38_v31 = vld [vmem:[%s3239_s2] sm:$0x3]  ;;  %s2682_s2 = smov 32   ;;  %v27_v4 = vld [vmem:[%s3237_s0 + $0x8] sm:$0xff] }
   0x7   :  { %v2802_v23 = vpack.c.bf16 %v286_v22, %v285_v21  ;;  %v2829_v34 = vrot.slane %v38_v31, %v42_v30  ;;  %v2834_v42 = vrot.slane %v38_v31, %v46_v39 }
   0x8   :  { %2085 = vmatmul.mubr.msk.f32.vlgmr.msra.gmra.mrb[0].mxu1 %vm50_vm0, %v31_v9  ;;  %2080 = vmatmul.mubr.msk.f32.vlgmr.msra.gmra.mrb[0].mxu0 %vm50_vm0, %v26_v11 }
   0x9   :  { %2433 = vmatpush3.bf16.msra.mxu1 %v2748_v10  ;;  %175 = vmatprep.mubr.f32.mxu1 %v2679_v3 }
   0xa   :  { %2434 = vmatprep.subr.bf16.mxu1 %v2680_v12  ;;  %145 = vmatprep.mubr.f32.mxu0 %v2679_v3 }
   0xb   :  { %2457 = vmatpush3.bf16.msra.mxu0 %v2748_v10 }
   0xc   :  { %2086 = vmatmul.mubr.msk.f32.gmra.mrb[2].mxu1 %vm50_vm0, %v32_v15  ;;  %2458 = vmatprep.subr.bf16.mxu0 %v2680_v12 }
   0xd   :  { %181 = vmatprep.mubr.f32.mxu1 %v2679_v3  ;;  %2436 = vmatpush3.bf16.msra.mxu1 %v2768_v16 }
   0xe   :  { %2437 = vmatprep.subr.bf16.mxu1 %v2680_v12  ;;  %2081 = vmatmul.mubr.msk.f32.gmra.mrb[2].mxu0 %vm50_vm0, %v27_v4 }
   0xf   :  { %2460 = vmatpush3.bf16.msra.mxu0 %v2768_v16  ;;  %151 = vmatprep.mubr.f32.mxu0 %v2679_v3 }
  0x10   :  { %2087 = vmatmul.mubr.msk.f32.gmra.mrb[4].mxu1 %vm50_vm0, %v33_v17  ;;  %2467 = vmatprep.subr.bf16.mxu0 %v2680_v12 }
  0x11   :  { %2231 = vmatprep.mubr.msk.f32.mxu1 %vm2681_vm1, %v2679_v3 }
  0x14   :  { %2232 = vmatmul.mubr.f32.vlgmr.msra.gmra.mrb[6].mxu1 %v2679_v3 }
  0x15   :  { %2439 = vmatpush3.bf16.msra.mxu1 %v2792_v20  ;;  %2242 = vmatprep.mubr.msk.f32.mxu1 %vm2681_vm1, %v2679_v3 }
  0x16   :  { %2440 = vmatprep.subr.bf16.mxu1 %v2680_v12 }
  0x19   :  { %2442 = vmatpush3.bf16.msra.mxu1 %v2802_v23 }
  0x1a   :  { %2443 = vmatprep.subr.bf16.mxu1 %v2680_v12 }
  0x1c   :  { %2243 = vmatmul.mubr.f32.vlgmr.msra.gmra.mrb[8].mxu1 %v2679_v3 }
  0x1d   :  { %2445 = vmatpush3.bf16.msra.mxu1 %v2748_v10  ;;  %2253 = vmatprep.mubr.msk.f32.mxu1 %vm2681_vm1, %v2679_v3 }
  0x1e   :  { %2446 = vmatprep.subr.bf16.mxu1 %v2680_v12 }
  0x21   :  { %2448 = vmatpush3.bf16.msra.mxu1 %v2768_v16 }
  0x22   :  { %2449 = vmatprep.subr.bf16.mxu1 %v2680_v12 }
  0xdb   :  { %v2816_v26 = vpop.f32.mrb[0].mxu1  ;;  %v141_v27 = vpop.f32.mrb[0].mxu0 }
  0xdc   :  { %v2818_v28 = vpop.f32.mrb[1].mxu1  ;;  %v2820_v29 = vpop.f32.mrb[1].mxu0  ;;  %v142_v37 = vadd.f32 %v141_v27, %v2829_v34 }
  0xdf   :  { %v2825_v32 = vpop.f32.mrb[2].mxu1 }
  0xe0   :  { %v2827_v33 = vpop.f32.mrb[3].mxu1 }
  0xe1   :  { %v147_v13 = vpop.f32.mrb[2].mxu0  ;;  %v180_v24 = vadd.f32 %v2827_v33, %v2834_v42 }
  0xe2   :  { %v2874_v17 = vpop.f32.mrb[3].mxu0  ;;  %v148_v18 = vadd.f32 %v147_v13, %v2829_v34 }
  0xe3   :  { %v2831_v35 = vpop.f32.mrb[4].mxu1 }
  0xe4   :  { %v185_v36 = vpop.f32.mrb[5].mxu1 }
  0xe5   :  { %v186_v43 = vadd.f32 %v185_v36, %v2834_v42 }
  0xe7   :  { %v279_v38 = vpop.f32.mrb[6].mxu1 }
  0xe8   :  { %v280_v40 = vadd.f32 %v279_v38, %v142_v37  ;;  %v2233_v41 = vpop.f32.mrb[7].mxu1 }
  0xea   :  { %2551 = vtanh.f32 %v280_v40  ;;  %v2088_v49 = vmul.f32 -1.442695, %v280_v40 }
  0xef   :  { %v354_v44 = vpop.f32.mrb[8].mxu1 }
  0xf0   :  { %v355_v45 = vadd.f32 %v354_v44, %v186_v43  ;;  %v2244_v46 = vpop.f32.mrb[9].mxu1 }
  0xf2   :  { %2553 = vtanh.f32 %v355_v45  ;;  %v2089_v50 = vmul.f32 -1.442695, %v355_v45 }
  0xf3   :  { %2555 = vpow2.f32 %v2088_v49 }
  0xf4   :  { %v2552_v47 = vpop.eup %2551  ;;  %2557 = vpow2.f32 %v2089_v50 }
  0xf5   :  { %367 = vrot.lane.b32.xlu0 %v2552_v47, %s2682_s2 }
  0xfc   :  { %v2554_v48 = vpop.eup %2553 }
  0xfd   :  { %391 = vrot.lane.b32.xlu0 %v2554_v48, %s2682_s2  ;;  %v2556_v51 = vpop.eup %2555 }
  0xfe   :  { %v361_v52 = vadd.f32 1.0, %v2556_v51  ;;  %v2558_v53 = vpop.eup %2557 }
  0xff   :  { %v385_v54 = vadd.f32 1.0, %v2558_v53 }
 0x100   :  { %2559 = vrcp.f32 %v361_v52 }
 0x101   :  { %2561 = vrcp.f32 %v385_v54 }
 0x10a   :  { %v2560_v55 = vpop.eup %2559 }
 0x10b   :  { %v2562_v58 = vpop.eup %2561  ;;  %v365_v61 = vmul.f32 0.0, %v2560_v55 }
 0x10c   :  { %v389_v0 = vmul.f32 0.0, %v2562_v58 }
 0x167   :  { %v368_v56 = vpop.permute.xlu0 %367 }
 0x168   :  { %v370_v57 = vmul.f32 %v2560_v55, %v368_v56 }
 0x16a   :  { %372 = vrot.lane.b32.xlu1 %v370_v57, %s2682_s2  ;;  %v29_v57 = vld [vmem:[%s3237_s0 + $0x18] sm:$0xff] }
 0x16f   :  { %v392_v59 = vpop.permute.xlu0 %391 }
 0x170   :  { %v394_v60 = vmul.f32 %v2562_v58, %v392_v59 }
 0x172   :  { %396 = vrot.lane.b32.xlu1 %v394_v60, %s2682_s2 }
 0x1dc   :  { %v373_v62 = vpop.permute.xlu1 %372 }
 0x1dd   :  { %v2841_v63 = vadd.f32 %v373_v62, %v365_v61 }
 0x1df   :  { %2563 = vtanh.f32 %v2841_v63 }
 0x1e4   :  { %v397_v1 = vpop.permute.xlu1 %396 }
 0x1e5   :  { %v2844_v2 = vadd.f32 %v397_v1, %v389_v0 }
 0x1e7   :  { %2565 = vtanh.f32 %v2844_v2 }
 0x1e9   :  { %v2564_v5 = vpop.eup %2563 }
 0x1ea   :  { %378 = vrot.lane.b32.xlu0 %v2564_v5, %s2682_s2 }
 0x1f1   :  { %v2566_v6 = vpop.eup %2565 }
 0x1f2   :  { %402 = vrot.lane.b32.xlu1 %v2566_v6, %s2682_s2 }
 0x25c   :  { %v379_v7 = vpop.permute.xlu0 %378 }
 0x25d   :  { %v381_v8 = vmul.f32 %v2560_v55, %v379_v7  ;;  %v28_v55 = vld [vmem:[%s3237_s0 + $0x10] sm:$0xff] }
 0x25e   :  { %2082 = vmatmul.mubr.msk.f32.gmra.mrb[4].mxu0 %vm50_vm0, %v28_v55 }
 0x25f   :  { %407 = vrot.lane.b32.xlu0 %v381_v8, %s2683_s13  ;;  %157 = vmatprep.mubr.f32.mxu0 %v2679_v3 }
 0x262   :  { %2083 = vmatmul.mubr.msk.f32.gmra.mrb[6].mxu0 %vm50_vm0, %v29_v57 }
 0x263   :  { %163 = vmatprep.mubr.f32.mxu0 %v2679_v3 }
 0x264   :  { %v403_v9 = vpop.permute.xlu1 %402 }
 0x265   :  { %v2855_v11 = vmul.f32 %v2562_v58, %v403_v9  ;;  %v30_v58 = vld [vmem:[%s3237_s0 + $0x20] sm:$0xff] }
 0x266   :  { %2084 = vmatmul.mubr.msk.f32.gmra.mrb[8].mxu0 %vm50_vm0, %v30_v58 }
 0x267   :  { %499 = vrot.lane.b32.xlu1 %v2855_v11, %s2683_s13  ;;  %2275 = vmatprep.mubr.msk.f32.mxu0 %vm2681_vm1, %v2679_v3 }
 0x2d1   :  { %v408_v14 = vpop.permute.xlu0 %407 }
 0x2d2   :  { %410 = vst.msk [vmem:[#allocation3] sm:$0xff] %vm209_vm2, %v408_v14  ;;  %2254 = vmatmul.mubr.msk.f32.vlgmr.msra.gmra.mrb[10].mxu1 %vm209_vm2, %v408_v14 }
 0x2d3   :  { %2451 = vmatpush3.bf16.msra.mxu1 %v2792_v20  ;;  %2264 = vmatprep.mubr.msk.f32.mxu1 %vm2681_vm1, %v2679_v3 }
 0x2d4   :  { %2452 = vmatprep.subr.bf16.mxu1 %v2680_v12 }
 0x2d7   :  { %2454 = vmatpush3.bf16.msra.mxu1 %v2802_v23 }
 0x2d8   :  { %2461 = vmatprep.subr.bf16.mxu1 %v2680_v12 }
 0x2d9   :  { %v500_v15 = vpop.permute.xlu1 %499 }
 0x2da   :  { %2265 = vmatmul.mubr.msk.f32.vlgmr.msra.gmra.mrb[12].mxu1 %vm209_vm2, %v500_v15 }
 0x2db   :  { %2463 = vmatpush3.bf16.msra.mxu1 %v2792_v20  ;;  %2286 = vmatprep.mubr.msk.f32.mxu1 %vm2681_vm1, %v2679_v3 }
 0x2dc   :  { %2464 = vmatprep.subr.bf16.mxu1 %v2680_v12 }
 0x2df   :  { %2466 = vmatpush3.bf16.msra.mxu1 %v2802_v23 }
 0x2e0   :  { %2473 = vmatprep.subr.bf16.mxu1 %v2680_v12 }
 0x331   :  { %v153_v0 = vpop.f32.mrb[4].mxu0 }
 0x332   :  { %v2914_v1 = vpop.f32.mrb[5].mxu0  ;;  %v154_v9 = vadd.f32 %v153_v0, %v2829_v34 }
 0x3a5   :  { %v490_v19 = vpop.f32.mrb[10].mxu1 }
 0x3a6   :  { %v491_v21 = vadd.f32 %v490_v19, %v148_v18  ;;  %v2255_v22 = vpop.f32.mrb[11].mxu1  ;;  %v174_v18 = vadd.f32 %v2818_v28, %v2834_v42 }
 0x3a8   :  { %2567 = vtanh.f32 %v491_v21  ;;  %v2092_v37 = vmul.f32 -1.442695, %v491_v21 }
 0x3ad   :  { %v569_v25 = vpop.f32.mrb[12].mxu1 }
 0x3ae   :  { %v570_v27 = vadd.f32 %v569_v25, %v180_v24  ;;  %v2266_v30 = vpop.f32.mrb[13].mxu1 }
 0x3b0   :  { %2569 = vtanh.f32 %v570_v27  ;;  %v2093_v38 = vmul.f32 -1.442695, %v570_v27 }
 0x3b1   :  { %2571 = vpow2.f32 %v2092_v37 }
 0x3b2   :  { %v2568_v31 = vpop.eup %2567  ;;  %2573 = vpow2.f32 %v2093_v38 }
 0x3b3   :  { %582 = vrot.lane.b32.xlu1 %v2568_v31, %s2682_s2 }
 0x3ba   :  { %v2570_v36 = vpop.eup %2569 }
 0x3bb   :  { %606 = vrot.lane.b32.xlu0 %v2570_v36, %s2682_s2  ;;  %v2572_v39 = vpop.eup %2571 }
 0x3bc   :  { %v576_v40 = vadd.f32 1.0, %v2572_v39  ;;  %v2574_v41 = vpop.eup %2573 }
 0x3bd   :  { %v600_v43 = vadd.f32 1.0, %v2574_v41 }
 0x3be   :  { %2575 = vrcp.f32 %v576_v40 }
 0x3bf   :  { %2577 = vrcp.f32 %v600_v43 }
 0x3c8   :  { %v2576_v33 = vpop.eup %2575 }
 0x3c9   :  { %v2578_v46 = vpop.eup %2577  ;;  %v580_v49 = vmul.f32 %v2576_v33, %v2841_v63 }
 0x3ca   :  { %v604_v52 = vmul.f32 %v2578_v46, %v2844_v2  ;;  %v2916_v2 = vpop.f32.mrb[6].mxu0 }
 0x3cb   :  { %v2918_v4 = vpop.f32.mrb[7].mxu0  ;;  %v160_v58 = vadd.f32 %v2916_v2, %v2829_v34 }
 0x3cc   :  { %v2920_v5 = vpop.f32.mrb[8].mxu0 }
 0x3cd   :  { %v2922_v6 = vpop.f32.mrb[9].mxu0 }
 0x425   :  { %v583_v44 = vpop.permute.xlu1 %582 }
 0x426   :  { %v585_v45 = vmul.f32 %v2576_v33, %v583_v44 }
 0x428   :  { %587 = vrot.lane.b32.xlu1 %v585_v45, %s2682_s2 }
 0x42d   :  { %v607_v47 = vpop.permute.xlu0 %606 }
 0x42e   :  { %v609_v48 = vmul.f32 %v2578_v46, %v607_v47 }
 0x430   :  { %611 = vrot.lane.b32.xlu0 %v609_v48, %s2682_s2 }
 0x49a   :  { %v588_v50 = vpop.permute.xlu1 %587 }
 0x49b   :  { %v2884_v51 = vadd.f32 %v588_v50, %v580_v49 }
 0x49d   :  { %2579 = vtanh.f32 %v2884_v51 }
 0x4a2   :  { %v612_v53 = vpop.permute.xlu0 %611 }
 0x4a3   :  { %v2888_v54 = vadd.f32 %v612_v53, %v604_v52 }
 0x4a5   :  { %2581 = vtanh.f32 %v2888_v54 }
 0x4a7   :  { %v2580_v56 = vpop.eup %2579 }
 0x4a8   :  { %593 = vrot.lane.b32.xlu1 %v2580_v56, %s2682_s2 }
 0x4af   :  { %v2582_v59 = vpop.eup %2581 }
 0x4b0   :  { %617 = vrot.lane.b32.xlu0 %v2582_v59, %s2682_s2 }
 0x51a   :  { %v594_v60 = vpop.permute.xlu1 %593 }
 0x51b   :  { %v596_v61 = vmul.f32 %v2576_v33, %v594_v60 }
 0x51d   :  { %622 = vrot.lane.b32.xlu1 %v596_v61, %s2683_s13 }
 0x522   :  { %v618_v62 = vpop.permute.xlu0 %617 }
 0x523   :  { %v2910_v63 = vmul.f32 %v2578_v46, %v618_v62  ;;  %v168_v62 = vadd.f32 %v2922_v6, %v2834_v42 }
 0x525   :  { %713 = vrot.lane.b32.xlu0 %v2910_v63, %s2683_s13 }
 0x58f   :  { %v623_v7 = vpop.permute.xlu1 %622 }
 0x590   :  { %625 = vst.msk [vmem:[#allocation3 + $0x8] sm:$0xff] %vm209_vm2, %v623_v7  ;;  %2276 = vmatmul.mubr.msk.f32.vlgmr.msra.gmra.mrb[10].mxu0 %vm209_vm2, %v623_v7 }
 0x591   :  { %2469 = vmatpush3.bf16.msra.mxu0 %v2748_v10  ;;  %2297 = vmatprep.mubr.msk.f32.mxu0 %vm2681_vm1, %v2679_v3 }
 0x592   :  { %2470 = vmatprep.subr.bf16.mxu0 %v2680_v12 }
 0x595   :  { %2472 = vmatpush3.bf16.msra.mxu0 %v2768_v16 }
 0x596   :  { %2479 = vmatprep.subr.bf16.mxu0 %v2680_v12 }
 0x597   :  { %v714_v8 = vpop.permute.xlu0 %713 }
 0x598   :  { %2287 = vmatmul.mubr.msk.f32.vlgmr.msra.gmra.mrb[14].mxu1 %vm209_vm2, %v714_v8 }
 0x599   :  { %2475 = vmatpush3.bf16.msra.mxu1 %v2792_v20  ;;  %2308 = vmatprep.mubr.msk.f32.mxu1 %vm2681_vm1, %v2679_v3 }
 0x59a   :  { %2476 = vmatprep.subr.bf16.mxu1 %v2680_v12 }
 0x59d   :  { %2478 = vmatpush3.bf16.msra.mxu1 %v2802_v23 }
 0x59e   :  { %2485 = vmatprep.subr.bf16.mxu1 %v2680_v12 }
 0x663   :  { %v704_v13 = vpop.f32.mrb[10].mxu0 }
 0x664   :  { %v705_v14 = vadd.f32 %v704_v13, %v154_v9  ;;  %v2277_v15 = vpop.f32.mrb[11].mxu0 }
 0x666   :  { %2583 = vtanh.f32 %v705_v14  ;;  %v2096_v27 = vmul.f32 -1.442695, %v705_v14 }
 0x66b   :  { %v783_v19 = vpop.f32.mrb[14].mxu1 }
 0x66c   :  { %v784_v21 = vadd.f32 %v783_v19, %v174_v18  ;;  %v2288_v22 = vpop.f32.mrb[15].mxu1 }
 0x66e   :  { %2585 = vtanh.f32 %v784_v21  ;;  %v2097_v30 = vmul.f32 -1.442695, %v784_v21 }
 0x66f   :  { %2587 = vpow2.f32 %v2096_v27 }
 0x670   :  { %v2584_v24 = vpop.eup %2583  ;;  %2589 = vpow2.f32 %v2097_v30 }
 0x671   :  { %796 = vrot.lane.b32.xlu1 %v2584_v24, %s2682_s2 }
 0x678   :  { %v2586_v25 = vpop.eup %2585 }
 0x679   :  { %820 = vrot.lane.b32.xlu0 %v2586_v25, %s2682_s2  ;;  %v2588_v31 = vpop.eup %2587 }
 0x67a   :  { %v790_v36 = vadd.f32 1.0, %v2588_v31  ;;  %v2590_v37 = vpop.eup %2589 }
 0x67b   :  { %v814_v38 = vadd.f32 1.0, %v2590_v37 }
 0x67c   :  { %2591 = vrcp.f32 %v790_v36 }
 0x67d   :  { %2593 = vrcp.f32 %v814_v38 }
 0x686   :  { %v2592_v28 = vpop.eup %2591 }
 0x687   :  { %v2594_v41 = vpop.eup %2593  ;;  %v794_v44 = vmul.f32 %v2592_v28, %v2884_v51 }
 0x688   :  { %v818_v47 = vmul.f32 %v2594_v41, %v2888_v54 }
 0x6e3   :  { %v797_v39 = vpop.permute.xlu1 %796 }
 0x6e4   :  { %v799_v40 = vmul.f32 %v2592_v28, %v797_v39 }
 0x6e6   :  { %801 = vrot.lane.b32.xlu1 %v799_v40, %s2682_s2 }
 0x6eb   :  { %v821_v43 = vpop.permute.xlu0 %820 }
 0x6ec   :  { %v823_v33 = vmul.f32 %v2594_v41, %v821_v43 }
 0x6ee   :  { %825 = vrot.lane.b32.xlu0 %v823_v33, %s2682_s2 }
 0x758   :  { %v802_v45 = vpop.permute.xlu1 %801 }
 0x759   :  { %v2947_v46 = vadd.f32 %v802_v45, %v794_v44 }
 0x75b   :  { %2595 = vtanh.f32 %v2947_v46 }
 0x760   :  { %v826_v48 = vpop.permute.xlu0 %825 }
 0x761   :  { %v2951_v49 = vadd.f32 %v826_v48, %v818_v47  ;;  %v166_v48 = vadd.f32 %v2920_v5, %v2829_v34 }
 0x763   :  { %2597 = vtanh.f32 %v2951_v49 }
 0x765   :  { %v2596_v50 = vpop.eup %2595 }
 0x766   :  { %807 = vrot.lane.b32.xlu1 %v2596_v50, %s2682_s2 }
 0x76d   :  { %v2598_v52 = vpop.eup %2597 }
 0x76e   :  { %831 = vrot.lane.b32.xlu0 %v2598_v52, %s2682_s2 }
 0x7d8   :  { %v808_v53 = vpop.permute.xlu1 %807 }
 0x7d9   :  { %v810_v51 = vmul.f32 %v2592_v28, %v808_v53  ;;  %v162_v53 = vadd.f32 %v2918_v4, %v2834_v42 }
 0x7db   :  { %836 = vrot.lane.b32.xlu1 %v810_v51, %s2683_s13 }
 0x7e0   :  { %v832_v55 = vpop.permute.xlu0 %831 }
 0x7e1   :  { %v2957_v56 = vmul.f32 %v2594_v41, %v832_v55 }
 0x7e3   :  { %927 = vrot.lane.b32.xlu0 %v2957_v56, %s2683_s13 }
 0x84d   :  { %v837_v54 = vpop.permute.xlu1 %836 }
 0x84e   :  { %839 = vst.msk [vmem:[#allocation3 + $0x10] sm:$0xff] %vm209_vm2, %v837_v54  ;;  %2298 = vmatmul.mubr.msk.f32.vlgmr.msra.gmra.mrb[12].mxu0 %vm209_vm2, %v837_v54 }
 0x84f   :  { %2481 = vmatpush3.bf16.msra.mxu0 %v2748_v10  ;;  %2319 = vmatprep.mubr.msk.f32.mxu0 %vm2681_vm1, %v2679_v3 }
 0x850   :  { %2482 = vmatprep.subr.bf16.mxu0 %v2680_v12 }
 0x853   :  { %2484 = vmatpush3.bf16.msra.mxu0 %v2768_v16 }
 0x854   :  { %2491 = vmatprep.subr.bf16.mxu0 %v2680_v12 }
 0x855   :  { %v928_v57 = vpop.permute.xlu0 %927 }
 0x856   :  { %2309 = vmatmul.mubr.msk.f32.vlgmr.msra.gmra.mrb[16].mxu1 %vm209_vm2, %v928_v57 }
 0x857   :  { %2487 = vmatpush3.bf16.msra.mxu1 %v2792_v20  ;;  %2330 = vmatprep.mubr.msk.f32.mxu1 %vm2681_vm1, %v2679_v3 }
 0x858   :  { %2488 = vmatprep.subr.bf16.mxu1 %v2680_v12 }
 0x85b   :  { %2490 = vmatpush3.bf16.msra.mxu1 %v2802_v23 }
 0x85c   :  { %2497 = vmatprep.subr.bf16.mxu1 %v2680_v12 }
 0x921   :  { %v918_v59 = vpop.f32.mrb[12].mxu0 }
 0x922   :  { %v919_v60 = vadd.f32 %v918_v59, %v160_v58  ;;  %v2299_v61 = vpop.f32.mrb[13].mxu0 }
 0x924   :  { %2599 = vtanh.f32 %v919_v60  ;;  %v2100_v14 = vmul.f32 -1.442695, %v919_v60 }
 0x929   :  { %v997_v0 = vpop.f32.mrb[16].mxu1 }
 0x92a   :  { %v998_v7 = vadd.f32 %v997_v0, %v168_v62  ;;  %v2310_v8 = vpop.f32.mrb[17].mxu1 }
 0x92c   :  { %2601 = vtanh.f32 %v998_v7  ;;  %v2101_v2 = vmul.f32 -1.442695, %v998_v7 }
 0x92d   :  { %2603 = vpow2.f32 %v2100_v14 }
 0x92e   :  { %v2600_v9 = vpop.eup %2599  ;;  %2605 = vpow2.f32 %v2101_v2 }
 0x92f   :  { %1010 = vrot.lane.b32.xlu1 %v2600_v9, %s2682_s2 }
 0x936   :  { %v2602_v13 = vpop.eup %2601 }
 0x937   :  { %1034 = vrot.lane.b32.xlu0 %v2602_v13, %s2682_s2  ;;  %v2604_v15 = vpop.eup %2603 }
 0x938   :  { %v1004_v18 = vadd.f32 1.0, %v2604_v15  ;;  %v2606_v19 = vpop.eup %2605 }
 0x939   :  { %v1028_v21 = vadd.f32 1.0, %v2606_v19 }
 0x93a   :  { %2607 = vrcp.f32 %v1004_v18 }
 0x93b   :  { %2609 = vrcp.f32 %v1028_v21 }
 0x944   :  { %v2608_v6 = vpop.eup %2607 }
 0x945   :  { %v2610_v25 = vpop.eup %2609  ;;  %v1008_v31 = vmul.f32 %v2608_v6, %v2947_v46 }
 0x946   :  { %v1032_v38 = vmul.f32 %v2610_v25, %v2951_v49 }
 0x9a1   :  { %v1011_v22 = vpop.permute.xlu1 %1010 }
 0x9a2   :  { %v1013_v24 = vmul.f32 %v2608_v6, %v1011_v22 }
 0x9a4   :  { %1015 = vrot.lane.b32.xlu1 %v1013_v24, %s2682_s2 }
 0x9a9   :  { %v1035_v27 = vpop.permute.xlu0 %1034 }
 0x9aa   :  { %v1037_v30 = vmul.f32 %v2610_v25, %v1035_v27 }
 0x9ac   :  { %1039 = vrot.lane.b32.xlu0 %v1037_v30, %s2682_s2 }
 0xa16   :  { %v1016_v36 = vpop.permute.xlu1 %1015 }
 0xa17   :  { %v2985_v37 = vadd.f32 %v1016_v36, %v1008_v31 }
 0xa19   :  { %2611 = vtanh.f32 %v2985_v37 }
 0xa1e   :  { %v1040_v28 = vpop.permute.xlu0 %1039 }
 0xa1f   :  { %v2989_v39 = vadd.f32 %v1040_v28, %v1032_v38 }
 0xa21   :  { %2613 = vtanh.f32 %v2989_v39 }
 0xa23   :  { %v2612_v40 = vpop.eup %2611 }
 0xa24   :  { %1021 = vrot.lane.b32.xlu1 %v2612_v40, %s2682_s2 }
 0xa2b   :  { %v2614_v41 = vpop.eup %2613 }
 0xa2c   :  { %1045 = vrot.lane.b32.xlu0 %v2614_v41, %s2682_s2 }
 0xa96   :  { %v1022_v43 = vpop.permute.xlu1 %1021 }
 0xa97   :  { %v1024_v33 = vmul.f32 %v2608_v6, %v1022_v43 }
 0xa99   :  { %1050 = vrot.lane.b32.xlu1 %v1024_v33, %s2683_s13 }
 0xa9e   :  { %v1046_v44 = vpop.permute.xlu0 %1045 }
 0xa9f   :  { %v2995_v45 = vmul.f32 %v2610_v25, %v1046_v44 }
 0xaa1   :  { %1141 = vrot.lane.b32.xlu0 %v2995_v45, %s2683_s13 }
 0xb0b   :  { %v1051_v46 = vpop.permute.xlu1 %1050 }
 0xb0c   :  { %1053 = vst.msk [vmem:[#allocation3 + $0x18] sm:$0xff] %vm209_vm2, %v1051_v46  ;;  %2320 = vmatmul.mubr.msk.f32.vlgmr.msra.gmra.mrb[14].mxu0 %vm209_vm2, %v1051_v46 }
 0xb0d   :  { %2493 = vmatpush3.bf16.msra.mxu0 %v2748_v10  ;;  %2341 = vmatprep.mubr.msk.f32.mxu0 %vm2681_vm1, %v2679_v3 }
 0xb0e   :  { %2494 = vmatprep.subr.bf16.mxu0 %v2680_v12 }
 0xb11   :  { %2496 = vmatpush3.bf16.msra.mxu0 %v2768_v16 }
 0xb12   :  { %2503 = vmatprep.subr.bf16.mxu0 %v2680_v12 }
 0xb13   :  { %v1142_v47 = vpop.permute.xlu0 %1141 }
 0xb14   :  { %2331 = vmatmul.mubr.msk.f32.vlgmr.msra.gmra.mrb[18].mxu1 %vm209_vm2, %v1142_v47 }
 0xb15   :  { %2499 = vmatpush3.bf16.msra.mxu1 %v2792_v20  ;;  %2352 = vmatprep.mubr.msk.f32.mxu1 %vm2681_vm1, %v2679_v3 }
 0xb16   :  { %2500 = vmatprep.subr.bf16.mxu1 %v2680_v12 }
 0xb19   :  { %2502 = vmatpush3.bf16.msra.mxu1 %v2802_v23 }
 0xb1a   :  { %2509 = vmatprep.subr.bf16.mxu1 %v2680_v12 }
 0xbdf   :  { %v1132_v49 = vpop.f32.mrb[14].mxu0 }
 0xbe0   :  { %v1133_v50 = vadd.f32 %v1132_v49, %v166_v48  ;;  %v2321_v52 = vpop.f32.mrb[15].mxu0 }
 0xbe2   :  { %2615 = vtanh.f32 %v1133_v50  ;;  %v2104_v59 = vmul.f32 -1.442695, %v1133_v50 }
 0xbe7   :  { %v1211_v51 = vpop.f32.mrb[18].mxu1 }
 0xbe8   :  { %v1212_v55 = vadd.f32 %v1211_v51, %v162_v53  ;;  %v2332_v54 = vpop.f32.mrb[19].mxu1 }
 0xbea   :  { %2617 = vtanh.f32 %v1212_v55  ;;  %v2105_v5 = vmul.f32 -1.442695, %v1212_v55 }
 0xbeb   :  { %2619 = vpow2.f32 %v2104_v59 }
 0xbec   :  { %v2616_v57 = vpop.eup %2615  ;;  %2621 = vpow2.f32 %v2105_v5 }
 0xbed   :  { %1224 = vrot.lane.b32.xlu1 %v2616_v57, %s2682_s2 }
 0xbf4   :  { %v2618_v58 = vpop.eup %2617 }
 0xbf5   :  { %1248 = vrot.lane.b32.xlu0 %v2618_v58, %s2682_s2  ;;  %v2620_v60 = vpop.eup %2619 }
 0xbf6   :  { %v1218_v61 = vadd.f32 1.0, %v2620_v60  ;;  %v2622_v62 = vpop.eup %2621 }
 0xbf7   :  { %v1242_v0 = vadd.f32 1.0, %v2622_v62 }
 0xbf8   :  { %2623 = vrcp.f32 %v1218_v61 }
 0xbf9   :  { %2625 = vrcp.f32 %v1242_v0 }
 0xc02   :  { %v2624_v4 = vpop.eup %2623 }
 0xc03   :  { %v2626_v9 = vpop.eup %2625  ;;  %v1222_v2 = vmul.f32 %v2624_v4, %v2985_v37 }
 0xc04   :  { %v1246_v19 = vmul.f32 %v2626_v9, %v2989_v39  ;;  %v156_v39 = vadd.f32 %v2914_v1, %v2834_v42 }
 0xc5f   :  { %v1225_v7 = vpop.permute.xlu1 %1224 }
 0xc60   :  { %v1227_v8 = vmul.f32 %v2624_v4, %v1225_v7 }
 0xc62   :  { %1229 = vrot.lane.b32.xlu1 %v1227_v8, %s2682_s2 }
 0xc67   :  { %v1249_v13 = vpop.permute.xlu0 %1248 }
 0xc68   :  { %v1251_v14 = vmul.f32 %v2626_v9, %v1249_v13  ;;  %v178_v13 = vadd.f32 %v2825_v32, %v2829_v34 }
 0xc6a   :  { %1253 = vrot.lane.b32.xlu0 %v1251_v14, %s2682_s2 }
 0xcd4   :  { %v1230_v15 = vpop.permute.xlu1 %1229 }
 0xcd5   :  { %v1232_v18 = vadd.f32 %v1230_v15, %v1222_v2 }
 0xcd7   :  { %2627 = vtanh.f32 %v1232_v18 }
 0xcdc   :  { %v1254_v21 = vpop.permute.xlu0 %1253 }
 0xcdd   :  { %v1256_v6 = vadd.f32 %v1254_v21, %v1246_v19 }
 0xcdf   :  { %2629 = vtanh.f32 %v1256_v6 }
 0xce1   :  { %v2628_v22 = vpop.eup %2627 }
 0xce2   :  { %1235 = vrot.lane.b32.xlu1 %v2628_v22, %s2682_s2 }
 0xce9   :  { %v2630_v24 = vpop.eup %2629 }
 0xcea   :  { %1259 = vrot.lane.b32.xlu0 %v2630_v24, %s2682_s2 }
 0xd54   :  { %v1236_v25 = vpop.permute.xlu1 %1235 }
 0xd55   :  { %v1238_v27 = vmul.f32 %v2624_v4, %v1236_v25 }
 0xd57   :  { %1264 = vrot.lane.b32.xlu1 %v1238_v27, %s2683_s13 }
 0xd5c   :  { %v1260_v30 = vpop.permute.xlu0 %1259 }
 0xd5d   :  { %v3027_v31 = vmul.f32 %v2626_v9, %v1260_v30 }
 0xd5f   :  { %1355 = vrot.lane.b32.xlu0 %v3027_v31, %s2683_s13 }
 0xdc9   :  { %v3031_v36 = vpop.permute.xlu1 %1264 }
 0xdca   :  { %2342 = vmatmul.mubr.msk.f32.vlgmr.msra.gmra.mrb[16].mxu0 %vm209_vm2, %v3031_v36 }
 0xdcb   :  { %2505 = vmatpush3.bf16.msra.mxu0 %v2748_v10  ;;  %2363 = vmatprep.mubr.msk.f32.mxu0 %vm2681_vm1, %v2679_v3  ;;  %v172_v10 = vadd.f32 %v2816_v26, %v2829_v34 }
 0xdcc   :  { %2506 = vmatprep.subr.bf16.mxu0 %v2680_v12 }
 0xdcf   :  { %2508 = vmatpush3.bf16.msra.mxu0 %v2768_v16 }
 0xdd0   :  { %2515 = vmatprep.subr.bf16.mxu0 %v2680_v12 }
 0xdd1   :  { %v1356_v37 = vpop.permute.xlu0 %1355 }
 0xdd2   :  { %2353 = vmatmul.mubr.msk.f32.vlgmr.msra.gmra.mrb[20].mxu1 %vm209_vm2, %v1356_v37 }
 0xdd3   :  { %2511 = vmatpush3.bf16.msra.mxu1 %v2792_v20  ;;  %2374 = vmatprep.mubr.msk.f32.mxu1 %vm2681_vm1, %v2679_v3 }
 0xdd4   :  { %2512 = vmatprep.subr.bf16.mxu1 %v2680_v12 }
 0xdd7   :  { %2514 = vmatpush3.bf16.msra.mxu1 %v2802_v23 }
 0xdd8   :  { %2521 = vmatprep.subr.bf16.mxu1 %v2680_v12 }
 0xe9d   :  { %v1346_v16 = vpop.f32.mrb[16].mxu0 }
 0xe9e   :  { %v1347_v38 = vadd.f32 %v1346_v16, %v172_v10  ;;  %v2343_v28 = vpop.f32.mrb[17].mxu0 }
 0xea0   :  { %2631 = vtanh.f32 %v1347_v38  ;;  %v2108_v33 = vmul.f32 -1.442695, %v1347_v38 }
 0xea5   :  { %v1425_v20 = vpop.f32.mrb[20].mxu1 }
 0xea6   :  { %v1426_v40 = vadd.f32 %v1425_v20, %v156_v39  ;;  %v2354_v41 = vpop.f32.mrb[21].mxu1 }
 0xea8   :  { %2633 = vtanh.f32 %v1426_v40  ;;  %v2109_v26 = vmul.f32 -1.442695, %v1426_v40 }
 0xea9   :  { %2635 = vpow2.f32 %v2108_v33 }
 0xeaa   :  { %v2632_v43 = vpop.eup %2631  ;;  %2637 = vpow2.f32 %v2109_v26  ;;  %v1701_v26 = vld [vmem:[%s3236_s3] sm:$0xff] }
 0xeab   :  { %1438 = vrot.lane.b32.xlu1 %v2632_v43, %s2682_s2 }
 0xeb2   :  { %v2634_v23 = vpop.eup %2633 }
 0xeb3   :  { %1462 = vrot.lane.b32.xlu0 %v2634_v23, %s2682_s2  ;;  %v2636_v44 = vpop.eup %2635 }
 0xeb4   :  { %v1432_v46 = vadd.f32 1.0, %v2636_v44  ;;  %v2638_v47 = vpop.eup %2637  ;;  %v1702_v44 = vld [vmem:[%s3236_s3 + $0x8] sm:$0xff] }
 0xeb5   :  { %v1456_v48 = vadd.f32 1.0, %v2638_v47  ;;  %v2516_v47 = vpack.c.bf16 %v1702_v44, %v1701_v26 }
 0xeb6   :  { %2639 = vrcp.f32 %v1432_v46  ;;  %v1703_v46 = vld [vmem:[%s3236_s3 + $0x10] sm:$0xff] }
 0xeb7   :  { %2641 = vrcp.f32 %v1456_v48  ;;  %v1704_v48 = vld [vmem:[%s3236_s3 + $0x18] sm:$0xff] }
 0xec0   :  { %v2640_v1 = vpop.eup %2639 }
 0xec1   :  { %v2642_v52 = vpop.eup %2641  ;;  %v1436_v55 = vmul.f32 %v2640_v1, %v1232_v18  ;;  %v150_v18 = vadd.f32 %v2874_v17, %v2834_v42 }
 0xec2   :  { %v1460_v58 = vmul.f32 %v2642_v52, %v1256_v6 }
 0xf1d   :  { %v1439_v49 = vpop.permute.xlu1 %1438 }
 0xf1e   :  { %v1441_v50 = vmul.f32 %v2640_v1, %v1439_v49  ;;  %v2519_v49 = vpack.c.bf16 %v1704_v48, %v1703_v46  ;;  %v1930_v46 = vld [vmem:[%s3240_s5 + $0x38] sm:$0xff] }
 0xf20   :  { %1443 = vrot.lane.b32.xlu1 %v1441_v50, %s2682_s2 }
 0xf25   :  { %v1463_v53 = vpop.permute.xlu0 %1462 }
 0xf26   :  { %v1465_v51 = vmul.f32 %v2642_v52, %v1463_v53  ;;  %v1779_v53 = vld [vmem:[%s3238_s4 + $0x8] sm:$0xff] }
 0xf28   :  { %1467 = vrot.lane.b32.xlu0 %v1465_v51, %s2682_s2 }
 0xf92   :  { %v1444_v54 = vpop.permute.xlu1 %1443 }
 0xf93   :  { %v1446_v57 = vadd.f32 %v1444_v54, %v1436_v55  ;;  %v1780_v55 = vld [vmem:[%s3238_s4 + $0x10] sm:$0xff]  ;;  %v1781_v54 = vld [vmem:[%s3238_s4 + $0x18] sm:$0xff] }
 0xf95   :  { %2643 = vtanh.f32 %v1446_v57 }
 0xf9a   :  { %v1468_v59 = vpop.permute.xlu0 %1467 }
 0xf9b   :  { %v1470_v5 = vadd.f32 %v1468_v59, %v1460_v58 }
 0xf9d   :  { %2645 = vtanh.f32 %v1470_v5 }
 0xf9f   :  { %v2644_v60 = vpop.eup %2643 }
 0xfa0   :  { %1449 = vrot.lane.b32.xlu1 %v2644_v60, %s2682_s2 }
 0xfa7   :  { %v2646_v61 = vpop.eup %2645 }
 0xfa8   :  { %1473 = vrot.lane.b32.xlu0 %v2646_v61, %s2682_s2 }
0x1012   :  { %v1450_v62 = vpop.permute.xlu1 %1449 }
0x1013   :  { %v1452_v0 = vmul.f32 %v2640_v1, %v1450_v62 }
0x1015   :  { %1478 = vrot.lane.b32.xlu1 %v1452_v0, %s2683_s13 }
0x101a   :  { %v1474_v4 = vpop.permute.xlu0 %1473 }
0x101b   :  { %v3059_v7 = vmul.f32 %v2642_v52, %v1474_v4  ;;  %v1778_v52 = vld [vmem:[%s3238_s4] sm:$0xff]  ;;  %s2684_s4 = smov 96  }
0x101c   :  { %v2522_v51 = vpack.c.bf16 %v1779_v53, %v1778_v52 }
0x101d   :  { %1569 = vrot.lane.b32.xlu0 %v3059_v7, %s2683_s13 }
0x1087   :  { %v3063_v8 = vpop.permute.xlu1 %1478 }
0x1088   :  { %2364 = vmatmul.mubr.msk.f32.vlgmr.msra.gmra.mrb[18].mxu0 %vm209_vm2, %v3063_v8 }
0x1089   :  { %2385 = vmatprep.mubr.msk.f32.mxu0 %vm2681_vm1, %v2679_v3  ;;  %2517 = vmatpush3.bf16.msra.mxu0 %v2516_v47 }
0x108a   :  { %2518 = vmatprep.subr.bf16.mxu0 %v2680_v12 }
0x108d   :  { %2520 = vmatpush3.bf16.msra.mxu0 %v2519_v49 }
0x108f   :  { %v1570_v9 = vpop.permute.xlu0 %1569 }
0x1090   :  { %2375 = vmatmul.mubr.msk.f32.vlgmr.msra.gmra.mrb[22].mxu1 %vm209_vm2, %v1570_v9 }
0x1091   :  { %2396 = vmatprep.mubr.msk.f32.mxu1 %vm2681_vm1, %v2679_v3  ;;  %2523 = vmatpush3.bf16.msra.mxu1 %v2522_v51 }
0x1092   :  { %2524 = vmatprep.subr.bf16.mxu1 %v2680_v12  ;;  %v184_v12 = vadd.f32 %v2831_v35, %v2829_v34 }
0x115b   :  { %v1560_v14 = vpop.f32.mrb[18].mxu0 }
0x115c   :  { %v1561_v2 = vadd.f32 %v1560_v14, %v178_v13  ;;  %v2365_v15 = vpop.f32.mrb[19].mxu0  ;;  %v144_v13 = vadd.f32 %v2820_v29, %v2834_v42 }
0x115e   :  { %2647 = vtanh.f32 %v1561_v2  ;;  %v2112_v3 = vmul.f32 -1.442695, %v1561_v2 }
0x1163   :  { %v1639_v19 = vpop.f32.mrb[22].mxu1 }
0x1164   :  { %v1640_v21 = vadd.f32 %v1639_v19, %v150_v18  ;;  %v2376_v6 = vpop.f32.mrb[23].mxu1 }
0x1166   :  { %2649 = vtanh.f32 %v1640_v21  ;;  %v2113_v32 = vmul.f32 -1.442695, %v1640_v21 }
0x1167   :  { %2651 = vpow2.f32 %v2112_v3 }
0x1168   :  { %v2648_v22 = vpop.eup %2647  ;;  %2653 = vpow2.f32 %v2113_v32 }
0x1169   :  { %1652 = vrot.lane.b32.xlu1 %v2648_v22, %s2682_s2 }
0x1170   :  { %v2650_v24 = vpop.eup %2649 }
0x1171   :  { %1676 = vrot.lane.b32.xlu0 %v2650_v24, %s2682_s2  ;;  %v2652_v25 = vpop.eup %2651 }
0x1172   :  { %v1646_v27 = vadd.f32 1.0, %v2652_v25  ;;  %v2654_v30 = vpop.eup %2653 }
0x1173   :  { %v1670_v37 = vadd.f32 1.0, %v2654_v30 }
0x1174   :  { %2655 = vrcp.f32 %v1646_v27 }
0x1175   :  { %2657 = vrcp.f32 %v1670_v37 }
0x117e   :  { %v2656_v17 = vpop.eup %2655 }
0x117f   :  { %v2658_v38 = vpop.eup %2657  ;;  %v1650_v20 = vmul.f32 %v2656_v17, %v1446_v57  ;;  %v2525_v57 = vpack.c.bf16 %v1781_v54, %v1780_v55 }
0x1180   :  { %v1674_v43 = vmul.f32 %v2658_v38, %v1470_v5 }
0x1181   :  { %2526 = vmatpush3.bf16.msra.mxu1 %v2525_v57 }
0x11db   :  { %v1653_v10 = vpop.permute.xlu1 %1652 }
0x11dc   :  { %v1655_v16 = vmul.f32 %v2656_v17, %v1653_v10 }
0x11de   :  { %1657 = vrot.lane.b32.xlu1 %v1655_v16, %s2682_s2 }
0x11e3   :  { %v1677_v28 = vpop.permute.xlu0 %1676 }
0x11e4   :  { %v1679_v39 = vmul.f32 %v2658_v38, %v1677_v28 }
0x11e6   :  { %1681 = vrot.lane.b32.xlu0 %v1679_v39, %s2682_s2 }
0x1250   :  { %v1658_v40 = vpop.permute.xlu1 %1657 }
0x1251   :  { %v3080_v41 = vadd.f32 %v1658_v40, %v1650_v20  ;;  %v1923_v20 = vld [vmem:[%s3240_s5] sm:$0xff]  ;;  %v1924_v40 = vld [vmem:[%s3240_s5 + $0x8] sm:$0xff] }
0x1253   :  { %2659 = vtanh.f32 %v3080_v41 }
0x1258   :  { %v1682_v23 = vpop.permute.xlu0 %1681 }
0x1259   :  { %v3083_v33 = vadd.f32 %v1682_v23, %v1674_v43  ;;  %v2527_v43 = vpack.c.bf16 %v1924_v40, %v1923_v20  ;;  %v1927_v23 = vld [vmem:[%s3240_s5 + $0x20] sm:$0xff] }
0x125b   :  { %2661 = vtanh.f32 %v3083_v33  ;;  %2528 = vmatprep.subr.bf16.mxu0 %v2527_v43 }
0x125d   :  { %v2660_v1 = vpop.eup %2659 }
0x125e   :  { %1663 = vrot.lane.b32.xlu1 %v2660_v1, %s2682_s2 }
0x1265   :  { %v2662_v50 = vpop.eup %2661 }
0x1266   :  { %1687 = vrot.lane.b32.xlu0 %v2662_v50, %s2682_s2 }
0x12d0   :  { %v1664_v58 = vpop.permute.xlu1 %1663 }
0x12d1   :  { %v1666_v59 = vmul.f32 %v2656_v17, %v1664_v58 }
0x12d3   :  { %1692 = vrot.lane.b32.xlu1 %v1666_v59, %s2683_s13 }
0x12d8   :  { %v1688_v5 = vpop.permute.xlu0 %1687 }
0x12d9   :  { %v1690_v60 = vmul.f32 %v2658_v38, %v1688_v5 }
0x12db   :  { %1783 = vrot.lane.b32.xlu0 %v1690_v60, %s2683_s13 }
0x1345   :  { %v3116_v61 = vpop.permute.xlu1 %1692 }
0x1346   :  { %2386 = vmatmul.mubr.msk.f32.vlgmr.msra.gmra.mrb[20].mxu0 %vm209_vm2, %v3116_v61 }
0x1347   :  { %2530 = vmatpush3.bf16.msra.mxu0 %v2527_v43 }
0x134d   :  { %v1784_v62 = vpop.permute.xlu0 %1783 }
0x134e   :  { %2397 = vmatmul.mubr.msk.f32.vlgmr.msra.gmra.mrb[24].mxu1 %vm209_vm2, %v1784_v62 }
0x1419   :  { %v1774_v0 = vpop.f32.mrb[20].mxu0 }
0x141a   :  { %v1775_v4 = vadd.f32 %v1774_v0, %v184_v12  ;;  %v2387_v9 = vpop.f32.mrb[21].mxu0 }
0x141c   :  { %2663 = vtanh.f32 %v1775_v4  ;;  %v2116_v21 = vmul.f32 -1.442695, %v1775_v4 }
0x1421   :  { %v1853_v14 = vpop.f32.mrb[24].mxu1 }
0x1422   :  { %v1854_v2 = vadd.f32 %v1853_v14, %v144_v13  ;;  %v2398_v15 = vpop.f32.mrb[25].mxu1 }
0x1424   :  { %2665 = vtanh.f32 %v1854_v2  ;;  %v2117_v34 = vmul.f32 -1.442695, %v1854_v2 }
0x1425   :  { %2667 = vpow2.f32 %v2116_v21 }
0x1426   :  { %v2664_v18 = vpop.eup %2663  ;;  %2669 = vpow2.f32 %v2117_v34 }
0x1427   :  { %1866 = vrot.lane.b32.xlu1 %v2664_v18, %s2682_s2 }
0x142e   :  { %v2666_v19 = vpop.eup %2665 }
0x142f   :  { %1890 = vrot.lane.b32.xlu0 %v2666_v19, %s2682_s2  ;;  %v2668_v35 = vpop.eup %2667 }
0x1430   :  { %v1860_v6 = vadd.f32 1.0, %v2668_v35  ;;  %v2670_v22 = vpop.eup %2669 }
0x1431   :  { %v1884_v24 = vadd.f32 1.0, %v2670_v22 }
0x1432   :  { %2671 = vrcp.f32 %v1860_v6 }
0x1433   :  { %2673 = vrcp.f32 %v1884_v24 }
0x143c   :  { %v3127_v29 = vpop.eup %2671 }
0x143d   :  { %v2674_v32 = vpop.eup %2673  ;;  %v1864_v30 = vmul.f32 %v3127_v29, %v3080_v41  ;;  %v1925_v41 = vld [vmem:[%s3240_s5 + $0x10] sm:$0xff] }
0x143e   :  { %v1888_v10 = vmul.f32 %v2674_v32, %v3083_v33  ;;  %v1928_v33 = vld [vmem:[%s3240_s5 + $0x28] sm:$0xff] }
0x143f   :  { %v2535_v26 = vpack.c.bf16 %v1928_v33, %v1927_v23 }
0x1499   :  { %v1867_v42 = vpop.permute.xlu1 %1866 }
0x149a   :  { %v1869_v3 = vmul.f32 %v3127_v29, %v1867_v42 }
0x149c   :  { %1871 = vrot.lane.b32.xlu1 %v1869_v3, %s2682_s2 }
0x14a1   :  { %v1891_v25 = vpop.permute.xlu0 %1890 }
0x14a2   :  { %v1893_v27 = vmul.f32 %v2674_v32, %v1891_v25 }
0x14a4   :  { %1895 = vrot.lane.b32.xlu0 %v1893_v27, %s2682_s2 }
0x150e   :  { %v1872_v37 = vpop.permute.xlu1 %1871 }
0x150f   :  { %v1874_v17 = vadd.f32 %v1872_v37, %v1864_v30 }
0x1511   :  { %2675 = vtanh.f32 %v1874_v17 }
0x1516   :  { %v1896_v16 = vpop.permute.xlu0 %1895 }
0x1517   :  { %v1898_v38 = vadd.f32 %v1896_v16, %v1888_v10 }
0x1519   :  { %2677 = vtanh.f32 %v1898_v38 }
0x151b   :  { %v2676_v28 = vpop.eup %2675 }
0x151c   :  { %1877 = vrot.lane.b32.xlu1 %v2676_v28, %s2682_s2 }
0x1520   :  { %1697 = vrot.lane.b32.xlu1 %v1690_v60, %s2684_s4 }
0x1523   :  { %v2678_v39 = vpop.eup %2677 }
0x1524   :  { %1901 = vrot.lane.b32.xlu0 %v2678_v39, %s2682_s2  ;;  %1269 = vrot.lane.b32.xlu1 %v3027_v31, %s2684_s4  ;;  %v1926_v31 = vld [vmem:[%s3240_s5 + $0x18] sm:$0xff] }
0x1528   :  { %841 = vrot.lane.b32.xlu1 %v2957_v56, %s2684_s4  ;;  %v2531_v56 = vpack.c.bf16 %v1926_v31, %v1925_v41 }
0x152a   :  { %2532 = vmatprep.subr.bf16.mxu0 %v2531_v56 }
0x152b   :  { %2534 = vmatpush3.bf16.msra.mxu0 %v2531_v56 }
0x152c   :  { %412 = vrot.lane.b32.xlu1 %v2855_v11, %s2684_s4  ;;  %2536 = vmatprep.subr.bf16.mxu0 %v2535_v26  ;;  %v1929_v11 = vld [vmem:[%s3240_s5 + $0x30] sm:$0xff] }
0x152d   :  { %v2539_v47 = vpack.c.bf16 %v1930_v46, %v1929_v11 }
0x152f   :  { %2538 = vmatpush3.bf16.msra.mxu0 %v2535_v26 }
0x1530   :  { %2540 = vmatprep.subr.bf16.mxu0 %v2539_v47 }
0x1533   :  { %2542 = vmatpush3.bf16.msra.mxu0 %v2539_v47 }
0x158e   :  { %v1878_v44 = vpop.permute.xlu1 %1877 }
0x158f   :  { %v1880_v51 = vmul.f32 %v3127_v29, %v1878_v44 }
0x1592   :  { %v1698_v48 = vpop.permute.xlu1 %1697 }
0x1593   :  { %1700 = vst.msk [vmem:[#allocation3 + $0x8] sm:$0xff] %vm415_vm3, %v1698_v48 }
0x1596   :  { %v1902_v1 = vpop.permute.xlu0 %1901  ;;  %v1270_v49 = vpop.permute.xlu1 %1269 }
0x1597   :  { %v1904_v50 = vmul.f32 %v2674_v32, %v1902_v1  ;;  %1272 = vst.msk [vmem:[#allocation3 + $0x18] sm:$0xff] %vm415_vm3, %v1270_v49 }
0x1599   :  { %1911 = vrot.lane.b32.xlu0 %v1904_v50, %s2684_s4 }
0x159a   :  { %v842_v52 = vpop.permute.xlu1 %841 }
0x159b   :  { %844 = vst.msk [vmem:[#allocation3 + $0x28] sm:$0xff] %vm415_vm3, %v842_v52 }
0x159c   :  { %1481 = vst.msk [vmem:[#allocation3 + $0x28] sm:$0xff] %vm209_vm2, %v3063_v8 }
0x159d   :  { %1483 = vrot.lane.b32.xlu0 %v3059_v7, %s2684_s4 }
0x159e   :  { %v413_v53 = vpop.permute.xlu1 %412  ;;  %v1918_v58 = vld [vmem:[#allocation3 + $0x18] sm:$0xff] }
0x159f   :  { %416 = vst.msk [vmem:[#allocation3 + $0x38] sm:$0xff] %vm415_vm3, %v413_v53 }
0x15a1   :  { %1055 = vrot.lane.b32.xlu0 %v2995_v45, %s2684_s4  ;;  %v1916_v45 = vld [vmem:[#allocation3 + $0x8] sm:$0xff] }
0x15a5   :  { %627 = vrot.lane.b32.xlu0 %v2910_v63, %s2684_s4 }
0x15a9   :  { %1906 = vrot.lane.b32.xlu0 %v1880_v51, %s2683_s13 }
0x160b   :  { %v1912_v55 = vpop.permute.xlu0 %1911 }
0x160c   :  { %1914 = vst.msk [vmem:[#allocation3] sm:$0xff] %vm415_vm3, %v1912_v55 }
0x160f   :  { %v1484_v8 = vpop.permute.xlu0 %1483 }
0x1610   :  { %1486 = vst.msk [vmem:[#allocation3 + $0x10] sm:$0xff] %vm415_vm3, %v1484_v8 }
0x1613   :  { %v1056_v7 = vpop.permute.xlu0 %1055  ;;  %v1915_v54 = vld [vmem:[#allocation3] sm:$0xff] }
0x1614   :  { %1058 = vst.msk [vmem:[#allocation3 + $0x20] sm:$0xff] %vm415_vm3, %v1056_v7  ;;  %2415 = vmatprep.mubr.msk.f32.mxu0 %vm1938_vm4, %v1915_v54 }
0x1615   :  { %1267 = vst.msk [vmem:[#allocation3 + $0x20] sm:$0xff] %vm209_vm2, %v3031_v36  ;;  %2416 = vmatmul.mubr.msk.f32.vlgmr.msra.gmra.mrb[22].mxu0 %vm1938_vm4, %v1916_v45  ;;  %v1920_v36 = vld [vmem:[#allocation3 + $0x28] sm:$0xff] }
0x1617   :  { %v628_v63 = vpop.permute.xlu0 %627  ;;  %v1917_v57 = vld [vmem:[#allocation3 + $0x10] sm:$0xff] }
0x1618   :  { %630 = vst.msk [vmem:[#allocation3 + $0x30] sm:$0xff] %vm415_vm3, %v628_v63  ;;  %2418 = vmatprep.mubr.msk.f32.mxu0 %vm1938_vm4, %v1917_v57 }
0x1619   :  { %1695 = vst.msk [vmem:[#allocation3 + $0x30] sm:$0xff] %vm209_vm2, %v3116_v61  ;;  %2419 = vmatmul.mubr.msk.f32.gmra.mrb[24].mxu0 %vm1938_vm4, %v1918_v58  ;;  %v2118_v61 = vld [vmem:[%s3241_s6] ss:$0 sm:$0xff] }
0x161b   :  { %v1907_v59 = vpop.permute.xlu0 %1906 }
0x161c   :  { %1909 = vst.msk [vmem:[#allocation3 + $0x38] sm:$0xff] %vm209_vm2, %v1907_v59  ;;  %v1919_v5 = vld [vmem:[#allocation3 + $0x20] sm:$0xff] }
0x161d   :  { %2421 = vmatprep.mubr.msk.f32.mxu0 %vm1938_vm4, %v1919_v5 }
0x161e   :  { %2422 = vmatmul.mubr.msk.f32.gmra.mrb[26].mxu0 %vm1938_vm4, %v1920_v36 }
0x1620   :  { %v1921_v60 = vld [vmem:[#allocation3 + $0x30] sm:$0xff] }
0x1621   :  { %2424 = vmatprep.mubr.msk.f32.mxu0 %vm1938_vm4, %v1921_v60 }
0x1623   :  { %v1922_v62 = vld [vmem:[#allocation3 + $0x38] sm:$0xff] }
0x1624   :  { %2425 = vmatmul.mubr.msk.f32.gmra.mrb[28].mxu0 %vm1938_vm4, %v1922_v62 }
0x16e8   :  { %v2417_v12 = vpop.f32.mrb[22].mxu0 }
0x16e9   :  { %v2035_v0 = vadd.f32 %v2417_v12, %v2118_v61  ;;  %v2029_v4 = vpop.f32.mrb[23].mxu0 }
0x16ea   :  { %v2030_v9 = vadd.f32 %v2118_v61, %v2029_v4 }
0x16eb   :  { %2069 = vst.msk [vmem:[%s3242_s7 + $0x8] sm:$0xff] %vm50_vm0, %v2035_v0 }
0x16ec   :  { %2068 = vst.msk [vmem:[%s3242_s7] sm:$0xff] %vm50_vm0, %v2030_v9  ;;  %v2420_v13 = vpop.f32.mrb[24].mxu0 }
0x16ed   :  { %v2045_v14 = vadd.f32 %v2420_v13, %v2118_v61  ;;  %v2039_v2 = vpop.f32.mrb[25].mxu0 }
0x16ee   :  { %v2040_v15 = vadd.f32 %v2118_v61, %v2039_v2 }
0x16ef   :  { %2071 = vst.msk [vmem:[%s3242_s7 + $0x18] sm:$0xff] %vm50_vm0, %v2045_v14 }
0x16f0   :  { %2070 = vst.msk [vmem:[%s3242_s7 + $0x10] sm:$0xff] %vm50_vm0, %v2040_v15 }
0x16f1   :  { %v2423_v18 = vpop.f32.mrb[26].mxu0 }
0x16f2   :  { %v2055_v19 = vadd.f32 %v2423_v18, %v2118_v61  ;;  %v2049_v21 = vpop.f32.mrb[27].mxu0 }
0x16f3   :  { %v2050_v34 = vadd.f32 %v2118_v61, %v2049_v21 }
0x16f4   :  { %2073 = vst.msk [vmem:[%s3242_s7 + $0x28] sm:$0xff] %vm50_vm0, %v2055_v19 }
0x16f5   :  { %2072 = vst.msk [vmem:[%s3242_s7 + $0x20] sm:$0xff] %vm50_vm0, %v2050_v34 }
0x16f7   :  { %v2426_v35 = vpop.f32.mrb[28].mxu0 }
0x16f8   :  { %v2065_v6 = vadd.f32 %v2426_v35, %v2118_v61  ;;  %v2059_v22 = vpop.f32.mrb[29].mxu0 }
0x16f9   :  { %v2060_v24 = vadd.f32 %v2118_v61, %v2059_v22 }
0x16fa   :  { %2075 = vst.msk [vmem:[%s3242_s7 + $0x38] sm:$0xff] %vm50_vm0, %v2065_v6 }
0x16fb   :  { %2074 = vst.msk [vmem:[%s3242_s7 + $0x30] sm:$0xff] %vm50_vm0, %v2060_v24 }

</bundles_post_ra>
